<compile_context>
chip_gen: v7x
topology: tpu7x:2x2x1
jax: 0.10.0
libtpu: 0.0.40
codegen_flags: <defaults>
</compile_context>

<pallas_src>
import functools

import jax
import jax.numpy as jnp
from jax.experimental import pallas as pl
from jax.experimental.pallas import tpu as pltpu


def _posenet_head_kernel(x_ref, wloc_ref, bloc_ref, whead_ref, bhead_ref,
                         pose_ref, acc_ref):
    """Grid axis 0 walks the 2048-channel reduction of fc_loc in tk chunks."""
    k = pl.program_id(0)

    @pl.when(k == 0)
    def _():
        acc_ref[...] = jnp.zeros_like(acc_ref)

    # Partial fc_loc matmul for this K-slab: (N, tk)bf16 @ (tk, 1024)bf16,
    # accumulated in f32.
    acc_ref[...] += jnp.dot(x_ref[...], wloc_ref[...],
                            preferred_element_type=jnp.float32)

    @pl.when(k == pl.num_programs(0) - 1)
    def _():
        # Bias + ReLU.  Dropout is the identity in eval mode.
        # TODO(synk): training-mode (scaled mask) dropout intentionally omitted.
        h = jnp.maximum(acc_ref[...] + bloc_ref[...], 0.0)        # (N, 1024)
        # Fused regression heads: pose = h @ [W1|W2] + [b1|b2] -> (N, 7)
        pose = jnp.dot(h, whead_ref[...],
                       preferred_element_type=jnp.float32) + bhead_ref[...]
        pose_ref[...] = pose.astype(pose_ref.dtype)


@jax.jit
def posenet_forward(features_nchw, w_loc, b_loc, w_head, b_head):
    """features_nchw: (N, 2048, H, W) backbone output (NCHW, like PyTorch)."""
    n, c, _, _ = features_nchw.shape
    c_loc = w_loc.shape[1]   # 1024
    c_out = w_head.shape[1]  # 7

    # AdaptiveAvgPool2d(1) done in the wrapper on NCHW (fused by XLA, no
    # transpose); kernel only sees the pooled (N, 2048) tensor.
    pooled = jnp.mean(features_nchw, axis=(2, 3))                 # (N, C) f32

    # Pad batch to a multiple of 8 (sublane-friendly); sliced off at the end.
    n_pad = max(8, ((n + 7) // 8) * 8)
    if n_pad != n:
        pooled = jnp.pad(pooled, ((0, n_pad - n), (0, 0)))

    # bf16 for the bandwidth-dominant fc_loc matmul inputs (f32 accumulate).
    pooled_bf16 = pooled.astype(jnp.bfloat16)
    w_loc_bf16 = w_loc.astype(jnp.bfloat16)

    # K-tile the 2048-deep reduction.
    tk = 512 if c % 512 == 0 else c
    n_k = c // tk

    grid_spec = pltpu.PrefetchScalarGridSpec(
        num_scalar_prefetch=0,
        grid=(n_k,),
        in_specs=[
            pl.BlockSpec((n_pad, tk), lambda k: (0, k)),      # pooled slab
            pl.BlockSpec((tk, c_loc), lambda k: (k, 0)),      # w_loc slab
            pl.BlockSpec((1, c_loc), lambda k: (0, 0)),       # b_loc (resident)
            pl.BlockSpec((c_loc, c_out), lambda k: (0, 0)),   # fused head W
            pl.BlockSpec((1, c_out), lambda k: (0, 0)),       # fused head b
        ],
        out_specs=pl.BlockSpec((n_pad, c_out), lambda k: (0, 0)),
        scratch_shapes=[pltpu.VMEM((n_pad, c_loc), jnp.float32)],
    )

    pose = pl.pallas_call(
        _posenet_head_kernel,
        out_shape=jax.ShapeDtypeStruct((n_pad, c_out), jnp.float32),
        grid_spec=grid_spec,
        compiler_params=pltpu.CompilerParams(
            dimension_semantics=("arbitrary",)),
    )(pooled_bf16, w_loc_bf16, b_loc, w_head, b_head)

    return pose[:n]


def init_params(key):
    """Deterministic synthetic parameters matching the module's shapes.

    fc_loc: Linear(2048, 1024); fc1: Linear(1024, 3); fc2: Linear(1024, 4).
    Weights ~ kaiming_normal (std = sqrt(2 / fan_in)); biases ~ U(+-1/sqrt(fan_in)).
    Stored as (in, out) so the kernel computes x @ W + b.
    """
    k = jax.random.split(key, 6)
    fan_loc, fan_head = 2048, 1024

    w_loc = jax.random.normal(k[0], (2048, 1024), jnp.float32) * jnp.sqrt(2.0 / fan_loc)
    b_loc = jax.random.uniform(k[1], (1, 1024), jnp.float32,
                               -1.0 / jnp.sqrt(fan_loc), 1.0 / jnp.sqrt(fan_loc))

    w1 = jax.random.normal(k[2], (1024, 3), jnp.float32) * jnp.sqrt(2.0 / fan_head)
    w2 = jax.random.normal(k[3], (1024, 4), jnp.float32) * jnp.sqrt(2.0 / fan_head)
    b1 = jax.random.uniform(k[4], (1, 3), jnp.float32,
                            -1.0 / jnp.sqrt(fan_head), 1.0 / jnp.sqrt(fan_head))
    b2 = jax.random.uniform(k[5], (1, 4), jnp.float32,
                            -1.0 / jnp.sqrt(fan_head), 1.0 / jnp.sqrt(fan_head))

    # Fuse the two regression heads (concat along dim=1 of their outputs).
    w_head = jnp.concatenate([w1, w2], axis=1)   # (1024, 7)
    b_head = jnp.concatenate([b1, b2], axis=1)   # (1, 7)
    return w_loc, b_loc, w_head, b_head


def reference_forward(features_nchw, w_loc, b_loc, w_head, b_head):
    """Pure-JAX reference with the same bf16-input / f32-accumulate recipe."""
    pooled = jnp.mean(features_nchw, axis=(2, 3))                 # (N, 2048)
    h = jnp.dot(pooled.astype(jnp.bfloat16), w_loc.astype(jnp.bfloat16),
                preferred_element_type=jnp.float32) + b_loc
    h = jnp.maximum(h, 0.0)                                       # (N, 1024)
    return jnp.dot(h, w_head,
                   preferred_element_type=jnp.float32) + b_head   # (N, 7)


if __name__ == "__main__":
    key = jax.random.PRNGKey(0)
    k_feat, k_param = jax.random.split(key)

    # Small shapes consistent with the forward pass: the truncated ResNet-101
    # always emits 2048 channels; spatial kept tiny (4x4), batch=2.
    N, C, H, W = 2, 2048, 4, 4
    features = jax.random.normal(k_feat, (N, C, H, W), jnp.float32)

    w_loc, b_loc, w_head, b_head = init_params(k_param)

    pose = posenet_forward(features, w_loc, b_loc, w_head, b_head)
    pose = jax.block_until_ready(pose)

    assert pose.shape == (N, 7), pose.shape
    ref = reference_forward(features, w_loc, b_loc, w_head, b_head)
    assert jnp.allclose(pose, ref, atol=2e-3, rtol=2e-3), (
        jnp.max(jnp.abs(pose - ref)))

    print("KERNEL_OK")
</pallas_src>

<mosaic_0001>
module attributes {stable_mosaic.version = 11 : i64} {
  func.func @_posenet_head_kernel(%arg0: i32, %arg1: memref<8x512xbf16, #tpu.memory_space<vmem>>, %arg2: memref<512x1024xbf16, #tpu.memory_space<vmem>>, %arg3: memref<1x1024xf32, #tpu.memory_space<vmem>>, %arg4: memref<1024x7xf32, #tpu.memory_space<vmem>>, %arg5: memref<1x7xf32, #tpu.memory_space<vmem>>, %arg6: memref<8x7xf32, #tpu.memory_space<vmem>>, %arg7: memref<8x1024xf32, #tpu.memory_space<vmem>>) attributes {dimension_semantics = [#tpu.dimension_semantics<arbitrary>], iteration_bounds = array<i64: 4>, scalar_prefetch = 0 : i64, scratch_operands = 1 : i64, tpu.core_type = #tpu.core_type<tc>, window_params = [{transform_indices = @transform_0, window_bounds = array<i64: 8, 512>}, {transform_indices = @transform_1, window_bounds = array<i64: 512, 1024>}, {pipeline_mode = #tpu.pipeline_mode<synchronous>, transform_indices = @transform_2, window_bounds = array<i64: 1, 1024>}, {pipeline_mode = #tpu.pipeline_mode<synchronous>, transform_indices = @transform_3, window_bounds = array<i64: 1024, 7>}, {pipeline_mode = #tpu.pipeline_mode<synchronous>, transform_indices = @transform_4, window_bounds = array<i64: 1, 7>}, {pipeline_mode = #tpu.pipeline_mode<synchronous>, transform_indices = @transform_5, window_bounds = array<i64: 8, 7>}]} {
    %c0_i32 = arith.constant 0 : i32
    %0 = arith.cmpi eq, %arg0, %c0_i32 : i32
    %1 = arith.extui %0 : i1 to i32
    %c0_i32_0 = arith.constant 0 : i32
    %2 = arith.cmpi ne, %1, %c0_i32_0 : i32
    scf.if %2 {
      %cst_9 = arith.constant 0.000000e+00 : f32
      %12 = vector.broadcast %cst_9 : f32 to vector<8x1024xf32>
      %c0_10 = arith.constant 0 : index
      %c0_11 = arith.constant 0 : index
      %13 = vector.load %arg7[%c0_10, %c0_11] : memref<8x1024xf32, #tpu.memory_space<vmem>>, vector<8x1024xf32>
      tpu.vector_store %arg7[%c0_10, %c0_11], %12 {strides = array<i32>} : memref<8x1024xf32, #tpu.memory_space<vmem>>, vector<8x1024xf32>,
    } else {
    }
    %c0 = arith.constant 0 : index
    %c0_1 = arith.constant 0 : index
    %3 = vector.load %arg7[%c0, %c0_1] : memref<8x1024xf32, #tpu.memory_space<vmem>>, vector<8x1024xf32>
    %c0_2 = arith.constant 0 : index
    %c0_3 = arith.constant 0 : index
    %4 = vector.load %arg1[%c0_2, %c0_3] : memref<8x512xbf16, #tpu.memory_space<vmem>>, vector<8x512xbf16>
    %c0_4 = arith.constant 0 : index
    %c0_5 = arith.constant 0 : index
    %5 = vector.load %arg2[%c0_4, %c0_5] : memref<512x1024xbf16, #tpu.memory_space<vmem>>, vector<512x1024xbf16>
    %cst = arith.constant dense<0.000000e+00> : vector<8x1024xf32>
    %6 = tpu.matmul %4, %5, %cst {dimension_numbers = #tpu.dot_dimension_numbers<[1], [0], [0], [1], [0, 0, 1, 1], [], []>} : vector<8x512xbf16>, vector<512x1024xbf16>, vector<8x1024xf32> -> vector<8x1024xf32>
    %7 = arith.addf %3, %6 : vector<8x1024xf32>
    %c0_6 = arith.constant 0 : index
    %c0_7 = arith.constant 0 : index
    %8 = vector.load %arg7[%c0_6, %c0_7] : memref<8x1024xf32, #tpu.memory_space<vmem>>, vector<8x1024xf32>
    tpu.vector_store %arg7[%c0_6, %c0_7], %7 {strides = array<i32>} : memref<8x1024xf32, #tpu.memory_space<vmem>>, vector<8x1024xf32>,
    %c3_i32 = arith.constant 3 : i32
    %9 = arith.cmpi eq, %arg0, %c3_i32 : i32
    %10 = arith.extui %9 : i1 to i32
    %c0_i32_8 = arith.constant 0 : i32
    %11 = arith.cmpi ne, %10, %c0_i32_8 : i32
    scf.if %11 {
      %c0_9 = arith.constant 0 : index
      %c0_10 = arith.constant 0 : index
      %12 = vector.load %arg7[%c0_9, %c0_10] : memref<8x1024xf32, #tpu.memory_space<vmem>>, vector<8x1024xf32>
      %c0_11 = arith.constant 0 : index
      %c0_12 = arith.constant 0 : index
      %13 = vector.load %arg3[%c0_11, %c0_12] : memref<1x1024xf32, #tpu.memory_space<vmem>>, vector<1x1024xf32>
      %14 = vector.broadcast %13 : vector<1x1024xf32> to vector<8x1024xf32>
      %15 = arith.addf %12, %14 : vector<8x1024xf32>
      %cst_13 = arith.constant 0.000000e+00 : f32
      %16 = vector.broadcast %cst_13 : f32 to vector<8x1024xf32>
      %17 = arith.maximumf %15, %16 : vector<8x1024xf32>
      %c0_14 = arith.constant 0 : index
      %c0_15 = arith.constant 0 : index
      %18 = vector.load %arg4[%c0_14, %c0_15] : memref<1024x7xf32, #tpu.memory_space<vmem>>, vector<1024x7xf32>
      %cst_16 = arith.constant dense<0.000000e+00> : vector<8x7xf32>
      %19 = tpu.matmul %17, %18, %cst_16 {dimension_numbers = #tpu.dot_dimension_numbers<[1], [0], [0], [1], [0, 0, 1, 1], [], []>} : vector<8x1024xf32>, vector<1024x7xf32>, vector<8x7xf32> -> vector<8x7xf32>
      %c0_17 = arith.constant 0 : index
      %c0_18 = arith.constant 0 : index
      %20 = vector.load %arg5[%c0_17, %c0_18] : memref<1x7xf32, #tpu.memory_space<vmem>>, vector<1x7xf32>
      %21 = vector.broadcast %20 : vector<1x7xf32> to vector<8x7xf32>
      %22 = arith.addf %19, %21 : vector<8x7xf32>
      %c0_19 = arith.constant 0 : index
      %c0_20 = arith.constant 0 : index
      %23 = vector.load %arg6[%c0_19, %c0_20] : memref<8x7xf32, #tpu.memory_space<vmem>>, vector<8x7xf32>
      tpu.vector_store %arg6[%c0_19, %c0_20], %22 {strides = array<i32>} : memref<8x7xf32, #tpu.memory_space<vmem>>, vector<8x7xf32>,
    } else {
    }
    return
  }
  func.func @transform_0(%arg0: i32) -> (i32, i32) {
    %c0_i32 = arith.constant 0 : i32
    %c0_i32_0 = arith.constant 0 : i32
    return %c0_i32, %arg0 : i32, i32
  }
  func.func @transform_1(%arg0: i32) -> (i32, i32) {
    %c0_i32 = arith.constant 0 : i32
    %c0_i32_0 = arith.constant 0 : i32
    return %arg0, %c0_i32 : i32, i32
  }
  func.func @transform_2(%arg0: i32) -> (i32, i32) {
    %c0_i32 = arith.constant 0 : i32
    %c0_i32_0 = arith.constant 0 : i32
    %c0_i32_1 = arith.constant 0 : i32
    return %c0_i32, %c0_i32_0 : i32, i32
  }
  func.func @transform_3(%arg0: i32) -> (i32, i32) {
    %c0_i32 = arith.constant 0 : i32
    %c0_i32_0 = arith.constant 0 : i32
    %c0_i32_1 = arith.constant 0 : i32
    return %c0_i32, %c0_i32_0 : i32, i32
  }
  func.func @transform_4(%arg0: i32) -> (i32, i32) {
    %c0_i32 = arith.constant 0 : i32
    %c0_i32_0 = arith.constant 0 : i32
    %c0_i32_1 = arith.constant 0 : i32
    return %c0_i32, %c0_i32_0 : i32, i32
  }
  func.func @transform_5(%arg0: i32) -> (i32, i32) {
    %c0_i32 = arith.constant 0 : i32
    %c0_i32_0 = arith.constant 0 : i32
    %c0_i32_1 = arith.constant 0 : i32
    return %c0_i32, %c0_i32_0 : i32, i32
  }
}

</mosaic_0001>

<bundles_post_ra>
// kernel: posenet_forward.1
= control target key start
LH: loop header
LB: loop body
LE: loop exit
PB: predicated region body
PF: predicated region fallthrough
CT: control target
= control target key end

     0   :  { %s3275_s18 = smov 0   ;;  %s4009_s0 = inlined_call_operand.vmem [shape: bf16[8,2048], index: 0, kind: input, shape index: {}]   ;;  %s4010_s1 = inlined_call_operand.vmem [shape: bf16[2048,1024], index: 1, kind: input, shape index: {}]   ;;  %s4011_s2 = inlined_call_operand.vmem [shape: f32[1,1024], index: 2, kind: input, shape index: {}]   ;;  %s4012_s3 = inlined_call_operand.vmem [shape: f32[1024,7], index: 3, kind: input, shape index: {}]   ;;  %s4013_s4 = inlined_call_operand.vmem [shape: f32[1,7], index: 4, kind: input, shape index: {}]   ;;  %s4014_s5 = inlined_call_operand.vmem [shape: f32[8,7], index: 5, kind: output, shape index: {}]  }
   0x1 LB: > { %s3281_s19 = sadd.s32 4294967295, %s3242_s18   ;;  %p2683_p0 = scmp.ge.s32.totalorder %s3242_s18, 1  ;;  %s3242_s18 = sphi %s3275_s18, %s15_s18  }
   0x2   : > { %p195_p1 = scmp.lt.s32.totalorder %s3242_s18, 5 }
   0x4   : > { %p196_p2 = pnand %p2683_p0, %p195_p1 }
   0x5   : > { %s2684_s20 = sshll.u32 (!%p196_p2), %s3281_s19, 2  ;;  %s2686_s21 = sshll.u32 (!%p196_p2), %s3281_s19, 6 }
   0x6   : > { %199 = sbr.rel (%p196_p2) target bundleno = 771 (0x303), region = 40  ;;  %p225_p3 = scmp.lt.s32.totalorder (!%p196_p2), %s2684_s20, 15 }
   0x7   : > { %p231_p4 = scmp.lt.s32.totalorder (!%p196_p2), %s2686_s21, 255  ;;  %p2689_p5 = scmp.ne.s32.totalorder (!%p196_p2), %s3281_s19, 0 }
   0xd   : > { %s4016_s20 = smov (!%p225_p3, %s2684_s20), 15  ;;  %s4018_s21 = smov (!%p231_p4, %s2686_s21), 255 }
   0xe   : > { %s2685_s22 = sshll.u32 %s4016_s20, 2  ;;  %s2954_s26 = sshll.u32 %s4018_s21, 5  ;;  %v3244_v0 = vmov (!%p2689_p5), 0.0  }
   0xf   : > { %s3290_s25 = scalar_lea.vmem %s4009_s0, %s2685_s22  ;;  %s3295_s29 = scalar_lea.vmem %s4010_s1, %s2954_s26  ;;  %241 = vst [vmem:[#allocation2] sm:$0xff] (!%p2689_p5), %v3244_v0  ;;  %242 = vst [vmem:[#allocation2 + $0x8] sm:$0xff] (!%p2689_p5), %v3244_v0 }
  0x10   : > { %240 = sbr.rel (%p2689_p5) target bundleno = 23 (0x17), region = 44  ;;  %243 = vst [vmem:[#allocation2 + $0x10] sm:$0xff] (!%p2689_p5), %v3244_v0  ;;  %244 = vst [vmem:[#allocation2 + $0x18] sm:$0xff] (!%p2689_p5), %v3244_v0 }
  0x11   : > { %245 = vst [vmem:[#allocation2 + $0x20] sm:$0xff] (!%p2689_p5), %v3244_v0  ;;  %246 = vst [vmem:[#allocation2 + $0x28] sm:$0xff] (!%p2689_p5), %v3244_v0 }
  0x12   : > { %247 = vst [vmem:[#allocation2 + $0x30] sm:$0xff] (!%p2689_p5), %v3244_v0  ;;  %248 = vst [vmem:[#allocation2 + $0x38] sm:$0xff] (!%p2689_p5), %v3244_v0 }
  0x17 PF: > { %v259_v1 = vld [vmem:[%s3295_s29] sm:$0xff]  ;;  %v3330_v55 = vld [vmem:[%s3290_s25 + $0x8] sm:$0xff]  ;;  %p2950_p6 = scmp.ne.s32.totalorder %s3281_s19, 3 }
  0x18   : > { %v263_v2 = vld [vmem:[%s3295_s29 + $0x20] sm:$0xff]  ;;  %v3340_v60 = vcombine.high %v3330_v55, %v3330_v55  ;;  %vm2638_vm0 = vcmask (!%p2950_p6), 56320  }
  0x19   : > { %v387_v3 = vld [vmem:[%s3295_s29 + $0x400] sm:$0xff]  ;;  %v2695_v4 = vcombine.high %v259_v1, %v263_v2  ;;  %v2694_v6 = vcombine.low %v259_v1, %v263_v2 }
  0x1a   : > { %v391_v5 = vld [vmem:[%s3295_s29 + $0x420] sm:$0xff]  ;;  %1882 = vmatprep.mubr.bf16.mxu1 %v3340_v60 }
  0x1b   : > { %v267_v7 = vld [vmem:[%s3295_s29 + $0x40] sm:$0xff]  ;;  %v2823_v9 = vcombine.high %v387_v3, %v391_v5  ;;  %v2822_v10 = vcombine.low %v387_v3, %v391_v5  ;;  %1809 = vmatprep.subr.bf16.mxu0 %v2695_v4 }
  0x1c   : > { %v271_v8 = vld [vmem:[%s3295_s29 + $0x60] sm:$0xff]  ;;  %1810 = vmatpush1.bf16.msra.mxu0 %v2694_v6 }
  0x1d   : > { %v2703_v11 = vcombine.high %v267_v7, %v271_v8  ;;  %v395_v12 = vld [vmem:[%s3295_s29 + $0x440] sm:$0xff]  ;;  %1850 = vmatprep.subr.bf16.mxu1 %v2823_v9  ;;  %v2702_v19 = vcombine.low %v267_v7, %v271_v8 }
  0x1e   : > { %v399_v13 = vld [vmem:[%s3295_s29 + $0x460] sm:$0xff]  ;;  %1851 = vmatpush1.bf16.msra.mxu1 %v2822_v10 }
  0x1f   : > { %v275_v14 = vld [vmem:[%s3295_s29 + $0x80] sm:$0xff]  ;;  %v2831_v15 = vcombine.high %v395_v12, %v399_v13  ;;  %1811 = vmatprep.subr.bf16.mxu0 %v2703_v11  ;;  %v2830_v20 = vcombine.low %v395_v12, %v399_v13 }
  0x20   : > { %v279_v16 = vld [vmem:[%s3295_s29 + $0xa0] sm:$0xff]  ;;  %1812 = vmatpush1.bf16.msra.mxu0 %v2702_v19 }
  0x21   : > { %v403_v17 = vld [vmem:[%s3295_s29 + $0x480] sm:$0xff]  ;;  %v2711_v21 = vcombine.high %v275_v14, %v279_v16  ;;  %1852 = vmatprep.subr.bf16.mxu1 %v2831_v15  ;;  %v2710_v27 = vcombine.low %v275_v14, %v279_v16 }
  0x22   : > { %v407_v18 = vld [vmem:[%s3295_s29 + $0x4a0] sm:$0xff]  ;;  %1853 = vmatpush1.bf16.msra.mxu1 %v2830_v20 }
  0x23   : > { %v2839_v22 = vcombine.high %v403_v17, %v407_v18  ;;  %v283_v23 = vld [vmem:[%s3295_s29 + $0xc0] sm:$0xff]  ;;  %1813 = vmatprep.subr.bf16.mxu0 %v2711_v21  ;;  %v2838_v28 = vcombine.low %v403_v17, %v407_v18 }
  0x24   : > { %v287_v24 = vld [vmem:[%s3295_s29 + $0xe0] sm:$0xff]  ;;  %1814 = vmatpush1.bf16.msra.mxu0 %v2710_v27 }
  0x25   : > { %v411_v25 = vld [vmem:[%s3295_s29 + $0x4c0] sm:$0xff]  ;;  %v2719_v29 = vcombine.high %v283_v23, %v287_v24  ;;  %1854 = vmatprep.subr.bf16.mxu1 %v2839_v22  ;;  %v2718_v35 = vcombine.low %v283_v23, %v287_v24 }
  0x26   : > { %v415_v26 = vld [vmem:[%s3295_s29 + $0x4e0] sm:$0xff]  ;;  %1855 = vmatpush1.bf16.msra.mxu1 %v2838_v28 }
  0x27   : > { %v2847_v30 = vcombine.high %v411_v25, %v415_v26  ;;  %v291_v31 = vld [vmem:[%s3295_s29 + $0x100] sm:$0xff]  ;;  %1815 = vmatprep.subr.bf16.mxu0 %v2719_v29  ;;  %v2846_v36 = vcombine.low %v411_v25, %v415_v26 }
  0x28   : > { %v295_v32 = vld [vmem:[%s3295_s29 + $0x120] sm:$0xff]  ;;  %1816 = vmatpush1.bf16.msra.mxu0 %v2718_v35 }
  0x29   : > { %v419_v33 = vld [vmem:[%s3295_s29 + $0x500] sm:$0xff]  ;;  %v2727_v37 = vcombine.high %v291_v31, %v295_v32  ;;  %1856 = vmatprep.subr.bf16.mxu1 %v2847_v30  ;;  %v2726_v43 = vcombine.low %v291_v31, %v295_v32 }
  0x2a   : > { %v423_v34 = vld [vmem:[%s3295_s29 + $0x520] sm:$0xff]  ;;  %1857 = vmatpush1.bf16.msra.mxu1 %v2846_v36 }
  0x2b   : > { %v2855_v38 = vcombine.high %v419_v33, %v423_v34  ;;  %v299_v39 = vld [vmem:[%s3295_s29 + $0x140] sm:$0xff]  ;;  %1817 = vmatprep.subr.bf16.mxu0 %v2727_v37  ;;  %v2854_v44 = vcombine.low %v419_v33, %v423_v34 }
  0x2c   : > { %v303_v40 = vld [vmem:[%s3295_s29 + $0x160] sm:$0xff]  ;;  %1818 = vmatpush1.bf16.msra.mxu0 %v2726_v43 }
  0x2d   : > { %v427_v41 = vld [vmem:[%s3295_s29 + $0x540] sm:$0xff]  ;;  %v2735_v45 = vcombine.high %v299_v39, %v303_v40  ;;  %1858 = vmatprep.subr.bf16.mxu1 %v2855_v38  ;;  %v2734_v51 = vcombine.low %v299_v39, %v303_v40 }
  0x2e   : > { %v431_v42 = vld [vmem:[%s3295_s29 + $0x560] sm:$0xff]  ;;  %1859 = vmatpush1.bf16.msra.mxu1 %v2854_v44 }
  0x2f   : > { %v2863_v46 = vcombine.high %v427_v41, %v431_v42  ;;  %v307_v47 = vld [vmem:[%s3295_s29 + $0x180] sm:$0xff]  ;;  %1819 = vmatprep.subr.bf16.mxu0 %v2735_v45  ;;  %v2862_v52 = vcombine.low %v427_v41, %v431_v42 }
  0x30   : > { %v311_v48 = vld [vmem:[%s3295_s29 + $0x1a0] sm:$0xff]  ;;  %1820 = vmatpush1.bf16.msra.mxu0 %v2734_v51 }
  0x31   : > { %v435_v49 = vld [vmem:[%s3295_s29 + $0x580] sm:$0xff]  ;;  %v2743_v53 = vcombine.high %v307_v47, %v311_v48  ;;  %1860 = vmatprep.subr.bf16.mxu1 %v2863_v46  ;;  %v2742_v63 = vcombine.low %v307_v47, %v311_v48 }
  0x32   : > { %v439_v50 = vld [vmem:[%s3295_s29 + $0x5a0] sm:$0xff]  ;;  %1861 = vmatpush1.bf16.msra.mxu1 %v2862_v52 }
  0x33   : > { %v3327_v54 = vld [vmem:[%s3290_s25] sm:$0xff]  ;;  %v2871_v56 = vcombine.high %v435_v49, %v439_v50  ;;  %1821 = vmatprep.subr.bf16.mxu0 %v2743_v53  ;;  %v2870_v0 = vcombine.low %v435_v49, %v439_v50 }
  0x34   : > { %v315_v57 = vld [vmem:[%s3295_s29 + $0x1c0] sm:$0xff]  ;;  %v3336_v59 = vcombine.high %v3327_v54, %v3327_v54  ;;  %1822 = vmatpush1.bf16.msra.mxu0 %v2742_v63 }
  0x35   : > { %v319_v58 = vld [vmem:[%s3295_s29 + $0x1e0] sm:$0xff]  ;;  %1862 = vmatprep.subr.bf16.mxu1 %v2871_v56 }
  0x36   : > { %v443_v61 = vld [vmem:[%s3295_s29 + $0x5c0] sm:$0xff]  ;;  %1841 = vmatprep.mubr.bf16.mxu0 %v3336_v59  ;;  %v2751_v1 = vcombine.high %v315_v57, %v319_v58  ;;  %v2750_v7 = vcombine.low %v315_v57, %v319_v58  ;;  %1863 = vmatpush1.bf16.msra.mxu1 %v2870_v0 }
  0x37   : > { %v447_v62 = vld [vmem:[%s3295_s29 + $0x5e0] sm:$0xff] }
  0x38   : > { %v2879_v2 = vcombine.high %v443_v61, %v447_v62  ;;  %v323_v3 = vld [vmem:[%s3295_s29 + $0x200] sm:$0xff]  ;;  %1823 = vmatprep.subr.bf16.mxu0 %v2751_v1  ;;  %v2878_v8 = vcombine.low %v443_v61, %v447_v62 }
  0x39   : > { %v327_v4 = vld [vmem:[%s3295_s29 + $0x220] sm:$0xff]  ;;  %1824 = vmatpush1.bf16.msra.mxu0 %v2750_v7  ;;  %v260_v7 = vld [vmem:[%s3295_s29 + $0x8] sm:$0xff] }
  0x3a   : > { %v451_v5 = vld [vmem:[%s3295_s29 + $0x600] sm:$0xff]  ;;  %v2759_v9 = vcombine.high %v323_v3, %v327_v4  ;;  %1864 = vmatprep.subr.bf16.mxu1 %v2879_v2  ;;  %v2758_v15 = vcombine.low %v323_v3, %v327_v4 }
  0x3b   : > { %v455_v6 = vld [vmem:[%s3295_s29 + $0x620] sm:$0xff]  ;;  %1865 = vmatpush1.bf16.msra.mxu1 %v2878_v8  ;;  %v264_v8 = vld [vmem:[%s3295_s29 + $0x28] sm:$0xff] }
  0x3c   : > { %v2887_v10 = vcombine.high %v451_v5, %v455_v6  ;;  %v331_v11 = vld [vmem:[%s3295_s29 + $0x240] sm:$0xff]  ;;  %1825 = vmatprep.subr.bf16.mxu0 %v2759_v9  ;;  %v2886_v16 = vcombine.low %v451_v5, %v455_v6  ;;  %v388_v9 = vld [vmem:[%s3295_s29 + $0x408] sm:$0xff] }
  0x3d   : > { %v335_v12 = vld [vmem:[%s3295_s29 + $0x260] sm:$0xff]  ;;  %1826 = vmatpush1.bf16.msra.mxu0 %v2758_v15  ;;  %v268_v15 = vld [vmem:[%s3295_s29 + $0x48] sm:$0xff] }
  0x3e   : > { %v459_v13 = vld [vmem:[%s3295_s29 + $0x640] sm:$0xff]  ;;  %v2767_v17 = vcombine.high %v331_v11, %v335_v12  ;;  %1866 = vmatprep.subr.bf16.mxu1 %v2887_v10  ;;  %v2766_v23 = vcombine.low %v331_v11, %v335_v12  ;;  %v392_v10 = vld [vmem:[%s3295_s29 + $0x428] sm:$0xff] }
  0x3f   : > { %v463_v14 = vld [vmem:[%s3295_s29 + $0x660] sm:$0xff]  ;;  %1867 = vmatpush1.bf16.msra.mxu1 %v2886_v16  ;;  %v272_v16 = vld [vmem:[%s3295_s29 + $0x68] sm:$0xff] }
  0x40   : > { %v2895_v18 = vcombine.high %v459_v13, %v463_v14  ;;  %v339_v19 = vld [vmem:[%s3295_s29 + $0x280] sm:$0xff]  ;;  %1827 = vmatprep.subr.bf16.mxu0 %v2767_v17  ;;  %v2894_v24 = vcombine.low %v459_v13, %v463_v14  ;;  %v2697_v13 = vcombine.high %v260_v7, %v264_v8  ;;  %v2825_v14 = vcombine.high %v388_v9, %v392_v10 }
  0x41   : > { %v343_v20 = vld [vmem:[%s3295_s29 + $0x2a0] sm:$0xff]  ;;  %1828 = vmatpush1.bf16.msra.mxu0 %v2766_v23  ;;  %v3386_v17 = vcombine.low %v3327_v54, %v3327_v54  ;;  %v2705_v23 = vcombine.high %v268_v15, %v272_v16  ;;  %v280_v54 = vld [vmem:[%s3295_s29 + $0xa8] sm:$0xff] }
  0x42   : > { %v467_v21 = vld [vmem:[%s3295_s29 + $0x680] sm:$0xff]  ;;  %v2775_v25 = vcombine.high %v339_v19, %v343_v20  ;;  %1868 = vmatprep.subr.bf16.mxu1 %v2895_v18  ;;  %v2774_v31 = vcombine.low %v339_v19, %v343_v20  ;;  %v396_v18 = vld [vmem:[%s3295_s29 + $0x448] sm:$0xff]  ;;  %v3392_v20 = vcombine.low %v3330_v55, %v3330_v55  ;;  %v2704_v55 = vcombine.low %v268_v15, %v272_v16 }
  0x43   : > { %v471_v22 = vld [vmem:[%s3295_s29 + $0x6a0] sm:$0xff]  ;;  %1869 = vmatpush1.bf16.msra.mxu1 %v2894_v24  ;;  %v400_v19 = vld [vmem:[%s3295_s29 + $0x468] sm:$0xff] }
  0x44   : > { %v2903_v26 = vcombine.high %v467_v21, %v471_v22  ;;  %v347_v27 = vld [vmem:[%s3295_s29 + $0x2c0] sm:$0xff]  ;;  %1829 = vmatprep.subr.bf16.mxu0 %v2775_v25  ;;  %v2902_v32 = vcombine.low %v467_v21, %v471_v22  ;;  %v2696_v21 = vcombine.low %v260_v7, %v264_v8  ;;  %v2824_v22 = vcombine.low %v388_v9, %v392_v10  ;;  %v276_v25 = vld [vmem:[%s3295_s29 + $0x88] sm:$0xff] }
  0x45   : > { %v351_v28 = vld [vmem:[%s3295_s29 + $0x2e0] sm:$0xff]  ;;  %1830 = vmatpush1.bf16.msra.mxu0 %v2774_v31  ;;  %v2833_v24 = vcombine.high %v396_v18, %v400_v19  ;;  %v284_v31 = vld [vmem:[%s3295_s29 + $0xc8] sm:$0xff] }
  0x46   : > { %v475_v29 = vld [vmem:[%s3295_s29 + $0x6c0] sm:$0xff]  ;;  %v2783_v33 = vcombine.high %v347_v27, %v351_v28  ;;  %1870 = vmatprep.subr.bf16.mxu1 %v2903_v26  ;;  %v2782_v39 = vcombine.low %v347_v27, %v351_v28  ;;  %v404_v26 = vld [vmem:[%s3295_s29 + $0x488] sm:$0xff]  ;;  %v2832_v28 = vcombine.low %v396_v18, %v400_v19 }
  0x47   : > { %v479_v30 = vld [vmem:[%s3295_s29 + $0x6e0] sm:$0xff]  ;;  %1871 = vmatpush1.bf16.msra.mxu1 %v2902_v32  ;;  %v408_v27 = vld [vmem:[%s3295_s29 + $0x4a8] sm:$0xff] }
  0x48   : > { %v2911_v34 = vcombine.high %v475_v29, %v479_v30  ;;  %v355_v35 = vld [vmem:[%s3295_s29 + $0x300] sm:$0xff]  ;;  %1831 = vmatprep.subr.bf16.mxu0 %v2783_v33  ;;  %v2910_v40 = vcombine.low %v475_v29, %v479_v30  ;;  %v2713_v29 = vcombine.high %v276_v25, %v280_v54  ;;  %v2841_v30 = vcombine.high %v404_v26, %v408_v27  ;;  %v288_v32 = vld [vmem:[%s3295_s29 + $0xe8] sm:$0xff] }
  0x49   : > { %v359_v36 = vld [vmem:[%s3295_s29 + $0x320] sm:$0xff]  ;;  %1832 = vmatpush1.bf16.msra.mxu0 %v2782_v39  ;;  %v412_v33 = vld [vmem:[%s3295_s29 + $0x4c8] sm:$0xff] }
  0x4a   : > { %v483_v37 = vld [vmem:[%s3295_s29 + $0x700] sm:$0xff]  ;;  %v2791_v41 = vcombine.high %v355_v35, %v359_v36  ;;  %1872 = vmatprep.subr.bf16.mxu1 %v2911_v34  ;;  %v2790_v47 = vcombine.low %v355_v35, %v359_v36  ;;  %v416_v34 = vld [vmem:[%s3295_s29 + $0x4e8] sm:$0xff]  ;;  %v2712_v35 = vcombine.low %v276_v25, %v280_v54  ;;  %v2840_v36 = vcombine.low %v404_v26, %v408_v27 }
  0x4b   : > { %v487_v38 = vld [vmem:[%s3295_s29 + $0x720] sm:$0xff]  ;;  %1873 = vmatpush1.bf16.msra.mxu1 %v2910_v40  ;;  %v292_v39 = vld [vmem:[%s3295_s29 + $0x108] sm:$0xff] }
  0x4c   : > { %v2919_v42 = vcombine.high %v483_v37, %v487_v38  ;;  %v363_v43 = vld [vmem:[%s3295_s29 + $0x340] sm:$0xff]  ;;  %1833 = vmatprep.subr.bf16.mxu0 %v2791_v41  ;;  %v2918_v48 = vcombine.low %v483_v37, %v487_v38  ;;  %v2721_v37 = vcombine.high %v284_v31, %v288_v32  ;;  %v2849_v38 = vcombine.high %v412_v33, %v416_v34  ;;  %v296_v40 = vld [vmem:[%s3295_s29 + $0x128] sm:$0xff] }
  0x4d   : > { %v367_v44 = vld [vmem:[%s3295_s29 + $0x360] sm:$0xff]  ;;  %1834 = vmatpush1.bf16.msra.mxu0 %v2790_v47  ;;  %v420_v41 = vld [vmem:[%s3295_s29 + $0x508] sm:$0xff] }
  0x4e   : > { %v491_v45 = vld [vmem:[%s3295_s29 + $0x740] sm:$0xff]  ;;  %v2799_v49 = vcombine.high %v363_v43, %v367_v44  ;;  %1874 = vmatprep.subr.bf16.mxu1 %v2919_v42  ;;  %v2798_v57 = vcombine.low %v363_v43, %v367_v44  ;;  %v424_v42 = vld [vmem:[%s3295_s29 + $0x528] sm:$0xff]  ;;  %v2720_v43 = vcombine.low %v284_v31, %v288_v32  ;;  %v2848_v44 = vcombine.low %v412_v33, %v416_v34 }
  0x4f   : > { %v495_v46 = vld [vmem:[%s3295_s29 + $0x760] sm:$0xff]  ;;  %1875 = vmatpush1.bf16.msra.mxu1 %v2918_v48  ;;  %v300_v47 = vld [vmem:[%s3295_s29 + $0x148] sm:$0xff] }
  0x50   : > { %v2927_v50 = vcombine.high %v491_v45, %v495_v46  ;;  %v371_v51 = vld [vmem:[%s3295_s29 + $0x380] sm:$0xff]  ;;  %1835 = vmatprep.subr.bf16.mxu0 %v2799_v49  ;;  %v2926_v58 = vcombine.low %v491_v45, %v495_v46  ;;  %v2729_v45 = vcombine.high %v292_v39, %v296_v40  ;;  %v2857_v46 = vcombine.high %v420_v41, %v424_v42  ;;  %v304_v48 = vld [vmem:[%s3295_s29 + $0x168] sm:$0xff] }
  0x51   : > { %v375_v52 = vld [vmem:[%s3295_s29 + $0x3a0] sm:$0xff]  ;;  %1836 = vmatpush1.bf16.msra.mxu0 %v2798_v57  ;;  %v428_v49 = vld [vmem:[%s3295_s29 + $0x548] sm:$0xff] }
  0x52   : > { %v499_v53 = vld [vmem:[%s3295_s29 + $0x780] sm:$0xff]  ;;  %v2807_v61 = vcombine.high %v371_v51, %v375_v52  ;;  %1876 = vmatprep.subr.bf16.mxu1 %v2927_v50  ;;  %v2806_v3 = vcombine.low %v371_v51, %v375_v52  ;;  %v432_v50 = vld [vmem:[%s3295_s29 + $0x568] sm:$0xff]  ;;  %v2728_v51 = vcombine.low %v292_v39, %v296_v40  ;;  %v2856_v52 = vcombine.low %v420_v41, %v424_v42 }
  0x53   : > { %v503_v56 = vld [vmem:[%s3295_s29 + $0x7a0] sm:$0xff]  ;;  %1877 = vmatpush1.bf16.msra.mxu1 %v2926_v58  ;;  %v308_v57 = vld [vmem:[%s3295_s29 + $0x188] sm:$0xff] }
  0x54   : > { %v2935_v62 = vcombine.high %v499_v53, %v503_v56  ;;  %v379_v63 = vld [vmem:[%s3295_s29 + $0x3c0] sm:$0xff]  ;;  %1837 = vmatprep.subr.bf16.mxu0 %v2807_v61  ;;  %v2934_v4 = vcombine.low %v499_v53, %v503_v56  ;;  %v2737_v53 = vcombine.high %v300_v47, %v304_v48  ;;  %v2865_v56 = vcombine.high %v428_v49, %v432_v50  ;;  %v312_v58 = vld [vmem:[%s3295_s29 + $0x1a8] sm:$0xff] }
  0x55   : > { %v383_v0 = vld [vmem:[%s3295_s29 + $0x3e0] sm:$0xff]  ;;  %1838 = vmatpush1.bf16.msra.mxu0 %v2806_v3  ;;  %v436_v61 = vld [vmem:[%s3295_s29 + $0x588] sm:$0xff]  ;;  %v2744_v7 = vcombine.low %v308_v57, %v312_v58 }
  0x56   : > { %v507_v1 = vld [vmem:[%s3295_s29 + $0x7c0] sm:$0xff]  ;;  %v2815_v5 = vcombine.high %v379_v63, %v383_v0  ;;  %1878 = vmatprep.subr.bf16.mxu1 %v2935_v62  ;;  %v2814_v11 = vcombine.low %v379_v63, %v383_v0  ;;  %v440_v62 = vld [vmem:[%s3295_s29 + $0x5a8] sm:$0xff]  ;;  %v2736_v63 = vcombine.low %v300_v47, %v304_v48  ;;  %v2864_v0 = vcombine.low %v428_v49, %v432_v50 }
  0x57   : > { %v511_v2 = vld [vmem:[%s3295_s29 + $0x7e0] sm:$0xff]  ;;  %1879 = vmatpush1.bf16.msra.mxu1 %v2934_v4  ;;  %v316_v3 = vld [vmem:[%s3295_s29 + $0x1c8] sm:$0xff]  ;;  %v2872_v8 = vcombine.low %v436_v61, %v440_v62 }
  0x58   : > { %v2943_v6 = vcombine.high %v507_v1, %v511_v2  ;;  %1839 = vmatprep.subr.bf16.mxu0 %v2815_v5  ;;  %v2942_v12 = vcombine.low %v507_v1, %v511_v2  ;;  %v2745_v1 = vcombine.high %v308_v57, %v312_v58  ;;  %v2873_v2 = vcombine.high %v436_v61, %v440_v62  ;;  %v320_v4 = vld [vmem:[%s3295_s29 + $0x1e8] sm:$0xff] }
  0x59   : > { %1840 = vmatpush1.bf16.msra.mxu0 %v2814_v11  ;;  %v444_v5 = vld [vmem:[%s3295_s29 + $0x5c8] sm:$0xff]  ;;  %v2753_v9 = vcombine.high %v316_v3, %v320_v4  ;;  %v2752_v15 = vcombine.low %v316_v3, %v320_v4 }
  0x5a   : > { %1880 = vmatprep.subr.bf16.mxu1 %v2943_v6  ;;  %1891 = vmatprep.subr.bf16.mxu0 %v2697_v13  ;;  %v448_v6 = vld [vmem:[%s3295_s29 + $0x5e8] sm:$0xff] }
  0x5b   : > { %1881 = vmatpush1.bf16.msra.mxu1 %v2942_v12  ;;  %v2881_v10 = vcombine.high %v444_v5, %v448_v6  ;;  %v324_v11 = vld [vmem:[%s3295_s29 + $0x208] sm:$0xff]  ;;  %v2880_v16 = vcombine.low %v444_v5, %v448_v6 }
  0x5c   : > { %1932 = vmatprep.subr.bf16.mxu1 %v2825_v14  ;;  %1842 = vmatmul.mubr.bf16.vlgmr.msra.gmra.mrb[0].mxu0 %v3386_v17  ;;  %v328_v12 = vld [vmem:[%s3295_s29 + $0x228] sm:$0xff] }
  0x5d   : > { %1892 = vmatpush1.bf16.msra.mxu0 %v2696_v21  ;;  %1923 = vmatprep.mubr.bf16.mxu0 %v3336_v59  ;;  %v452_v13 = vld [vmem:[%s3295_s29 + $0x608] sm:$0xff]  ;;  %v2761_v18 = vcombine.high %v324_v11, %v328_v12  ;;  %v2760_v25 = vcombine.low %v324_v11, %v328_v12 }
  0x5e   : > { %1883 = vmatmul.mubr.bf16.vlgmr.msra.gmra.mrb[0].mxu1 %v3392_v20  ;;  %1893 = vmatprep.subr.bf16.mxu0 %v2705_v23  ;;  %v456_v14 = vld [vmem:[%s3295_s29 + $0x628] sm:$0xff] }
  0x5f   : > { %1933 = vmatpush1.bf16.msra.mxu1 %v2824_v22  ;;  %1964 = vmatprep.mubr.bf16.mxu1 %v3340_v60  ;;  %v2889_v19 = vcombine.high %v452_v13, %v456_v14  ;;  %v332_v21 = vld [vmem:[%s3295_s29 + $0x248] sm:$0xff]  ;;  %v2888_v54 = vcombine.low %v452_v13, %v456_v14 }
  0x60   : > { %1934 = vmatprep.subr.bf16.mxu1 %v2833_v24  ;;  %v336_v22 = vld [vmem:[%s3295_s29 + $0x268] sm:$0xff] }
  0x61   : > { %1894 = vmatpush1.bf16.msra.mxu0 %v2704_v55  ;;  %v460_v23 = vld [vmem:[%s3295_s29 + $0x648] sm:$0xff]  ;;  %v2769_v26 = vcombine.high %v332_v21, %v336_v22  ;;  %v2768_v31 = vcombine.low %v332_v21, %v336_v22 }
  0x62   : > { %1895 = vmatprep.subr.bf16.mxu0 %v2713_v29  ;;  %v464_v24 = vld [vmem:[%s3295_s29 + $0x668] sm:$0xff] }
  0x63   : > { %1935 = vmatpush1.bf16.msra.mxu1 %v2832_v28  ;;  %v2897_v27 = vcombine.high %v460_v23, %v464_v24  ;;  %v340_v55 = vld [vmem:[%s3295_s29 + $0x288] sm:$0xff]  ;;  %v2896_v32 = vcombine.low %v460_v23, %v464_v24 }
  0x64   : > { %1936 = vmatprep.subr.bf16.mxu1 %v2841_v30  ;;  %v344_v28 = vld [vmem:[%s3295_s29 + $0x2a8] sm:$0xff] }
  0x65   : > { %1896 = vmatpush1.bf16.msra.mxu0 %v2712_v35  ;;  %v468_v29 = vld [vmem:[%s3295_s29 + $0x688] sm:$0xff]  ;;  %v2777_v33 = vcombine.high %v340_v55, %v344_v28  ;;  %v2776_v39 = vcombine.low %v340_v55, %v344_v28 }
  0x66   : > { %1897 = vmatprep.subr.bf16.mxu0 %v2721_v37  ;;  %v472_v30 = vld [vmem:[%s3295_s29 + $0x6a8] sm:$0xff] }
  0x67   : > { %1937 = vmatpush1.bf16.msra.mxu1 %v2840_v36  ;;  %v2905_v34 = vcombine.high %v468_v29, %v472_v30  ;;  %v348_v35 = vld [vmem:[%s3295_s29 + $0x2c8] sm:$0xff]  ;;  %v2904_v40 = vcombine.low %v468_v29, %v472_v30 }
  0x68   : > { %1938 = vmatprep.subr.bf16.mxu1 %v2849_v38  ;;  %v352_v36 = vld [vmem:[%s3295_s29 + $0x2e8] sm:$0xff] }
  0x69   : > { %1898 = vmatpush1.bf16.msra.mxu0 %v2720_v43  ;;  %v476_v37 = vld [vmem:[%s3295_s29 + $0x6c8] sm:$0xff]  ;;  %v2785_v41 = vcombine.high %v348_v35, %v352_v36  ;;  %v2784_v47 = vcombine.low %v348_v35, %v352_v36 }
  0x6a   : > { %1899 = vmatprep.subr.bf16.mxu0 %v2729_v45  ;;  %v480_v38 = vld [vmem:[%s3295_s29 + $0x6e8] sm:$0xff] }
  0x6b   : > { %1939 = vmatpush1.bf16.msra.mxu1 %v2848_v44  ;;  %v2913_v42 = vcombine.high %v476_v37, %v480_v38  ;;  %v356_v43 = vld [vmem:[%s3295_s29 + $0x308] sm:$0xff]  ;;  %v2912_v48 = vcombine.low %v476_v37, %v480_v38 }
  0x6c   : > { %1940 = vmatprep.subr.bf16.mxu1 %v2857_v46  ;;  %v360_v44 = vld [vmem:[%s3295_s29 + $0x328] sm:$0xff] }
  0x6d   : > { %1900 = vmatpush1.bf16.msra.mxu0 %v2728_v51  ;;  %v484_v45 = vld [vmem:[%s3295_s29 + $0x708] sm:$0xff]  ;;  %v2793_v49 = vcombine.high %v356_v43, %v360_v44  ;;  %v2792_v57 = vcombine.low %v356_v43, %v360_v44 }
  0x6e   : > { %1901 = vmatprep.subr.bf16.mxu0 %v2737_v53  ;;  %v488_v46 = vld [vmem:[%s3295_s29 + $0x728] sm:$0xff] }
  0x6f   : > { %1941 = vmatpush1.bf16.msra.mxu1 %v2856_v52  ;;  %v2921_v50 = vcombine.high %v484_v45, %v488_v46  ;;  %v364_v51 = vld [vmem:[%s3295_s29 + $0x348] sm:$0xff]  ;;  %v2920_v58 = vcombine.low %v484_v45, %v488_v46 }
  0x70   : > { %1942 = vmatprep.subr.bf16.mxu1 %v2865_v56  ;;  %v368_v52 = vld [vmem:[%s3295_s29 + $0x368] sm:$0xff] }
  0x71   : > { %1902 = vmatpush1.bf16.msra.mxu0 %v2736_v63  ;;  %v492_v53 = vld [vmem:[%s3295_s29 + $0x748] sm:$0xff]  ;;  %v2801_v61 = vcombine.high %v364_v51, %v368_v52  ;;  %v2800_v3 = vcombine.low %v364_v51, %v368_v52 }
  0x72   : > { %1903 = vmatprep.subr.bf16.mxu0 %v2745_v1  ;;  %v496_v56 = vld [vmem:[%s3295_s29 + $0x768] sm:$0xff] }
  0x73   : > { %1943 = vmatpush1.bf16.msra.mxu1 %v2864_v0  ;;  %v2929_v62 = vcombine.high %v492_v53, %v496_v56  ;;  %v372_v63 = vld [vmem:[%s3295_s29 + $0x388] sm:$0xff]  ;;  %v2928_v4 = vcombine.low %v492_v53, %v496_v56 }
  0x74   : > { %1944 = vmatprep.subr.bf16.mxu1 %v2873_v2  ;;  %v376_v0 = vld [vmem:[%s3295_s29 + $0x3a8] sm:$0xff] }
  0x75   : > { %1904 = vmatpush1.bf16.msra.mxu0 %v2744_v7  ;;  %v500_v1 = vld [vmem:[%s3295_s29 + $0x788] sm:$0xff]  ;;  %v2809_v5 = vcombine.high %v372_v63, %v376_v0  ;;  %v2808_v11 = vcombine.low %v372_v63, %v376_v0 }
  0x76   : > { %1905 = vmatprep.subr.bf16.mxu0 %v2753_v9  ;;  %v504_v2 = vld [vmem:[%s3295_s29 + $0x7a8] sm:$0xff] }
  0x77   : > { %1945 = vmatpush1.bf16.msra.mxu1 %v2872_v8  ;;  %v2937_v6 = vcombine.high %v500_v1, %v504_v2  ;;  %v380_v7 = vld [vmem:[%s3295_s29 + $0x3c8] sm:$0xff]  ;;  %v2936_v12 = vcombine.low %v500_v1, %v504_v2 }
  0x78   : > { %1946 = vmatprep.subr.bf16.mxu1 %v2881_v10  ;;  %v384_v8 = vld [vmem:[%s3295_s29 + $0x3e8] sm:$0xff] }
  0x79   : > { %1906 = vmatpush1.bf16.msra.mxu0 %v2752_v15  ;;  %v508_v9 = vld [vmem:[%s3295_s29 + $0x7c8] sm:$0xff]  ;;  %v2817_v13 = vcombine.high %v380_v7, %v384_v8  ;;  %v261_v15 = vld [vmem:[%s3295_s29 + $0x10] sm:$0xff]  ;;  %v2816_v21 = vcombine.low %v380_v7, %v384_v8 }
  0x7a   : > { %1907 = vmatprep.subr.bf16.mxu0 %v2761_v18  ;;  %v512_v10 = vld [vmem:[%s3295_s29 + $0x7e8] sm:$0xff]  ;;  %v389_v18 = vld [vmem:[%s3295_s29 + $0x410] sm:$0xff] }
  0x7b   : > { %1947 = vmatpush1.bf16.msra.mxu1 %v2880_v16  ;;  %v2945_v14 = vcombine.high %v508_v9, %v512_v10  ;;  %v265_v16 = vld [vmem:[%s3295_s29 + $0x30] sm:$0xff]  ;;  %v2944_v22 = vcombine.low %v508_v9, %v512_v10 }
  0x7c   : > { %1948 = vmatprep.subr.bf16.mxu1 %v2889_v19  ;;  %v393_v19 = vld [vmem:[%s3295_s29 + $0x430] sm:$0xff]  ;;  %v2699_v23 = vcombine.high %v261_v15, %v265_v16  ;;  %v2698_v55 = vcombine.low %v261_v15, %v265_v16 }
  0x7d   : > { %1908 = vmatpush1.bf16.msra.mxu0 %v2760_v25  ;;  %v2827_v24 = vcombine.high %v389_v18, %v393_v19  ;;  %v269_v25 = vld [vmem:[%s3295_s29 + $0x50] sm:$0xff]  ;;  %v2826_v28 = vcombine.low %v389_v18, %v393_v19 }
  0x7e   : > { %1909 = vmatprep.subr.bf16.mxu0 %v2769_v26  ;;  %v397_v26 = vld [vmem:[%s3295_s29 + $0x450] sm:$0xff] }
  0x7f   : > { %1949 = vmatpush1.bf16.msra.mxu1 %v2888_v54  ;;  %v273_v54 = vld [vmem:[%s3295_s29 + $0x70] sm:$0xff] }
  0x80   : > { %1950 = vmatprep.subr.bf16.mxu1 %v2897_v27  ;;  %v401_v27 = vld [vmem:[%s3295_s29 + $0x470] sm:$0xff]  ;;  %v2707_v29 = vcombine.high %v269_v25, %v273_v54  ;;  %v2706_v35 = vcombine.low %v269_v25, %v273_v54 }
  0x81   : > { %1910 = vmatpush1.bf16.msra.mxu0 %v2768_v31  ;;  %v2835_v30 = vcombine.high %v397_v26, %v401_v27  ;;  %v277_v31 = vld [vmem:[%s3295_s29 + $0x90] sm:$0xff]  ;;  %v2834_v36 = vcombine.low %v397_v26, %v401_v27 }
  0x82   : > { %1911 = vmatprep.subr.bf16.mxu0 %v2777_v33  ;;  %v405_v33 = vld [vmem:[%s3295_s29 + $0x490] sm:$0xff] }
  0x83   : > { %1951 = vmatpush1.bf16.msra.mxu1 %v2896_v32  ;;  %v281_v32 = vld [vmem:[%s3295_s29 + $0xb0] sm:$0xff] }
  0x84   : > { %1952 = vmatprep.subr.bf16.mxu1 %v2905_v34  ;;  %v409_v34 = vld [vmem:[%s3295_s29 + $0x4b0] sm:$0xff]  ;;  %v2715_v37 = vcombine.high %v277_v31, %v281_v32  ;;  %v2714_v43 = vcombine.low %v277_v31, %v281_v32 }
  0x85   : > { %1912 = vmatpush1.bf16.msra.mxu0 %v2776_v39  ;;  %v2843_v38 = vcombine.high %v405_v33, %v409_v34  ;;  %v285_v39 = vld [vmem:[%s3295_s29 + $0xd0] sm:$0xff]  ;;  %v2842_v44 = vcombine.low %v405_v33, %v409_v34 }
  0x86   : > { %1913 = vmatprep.subr.bf16.mxu0 %v2785_v41  ;;  %v413_v41 = vld [vmem:[%s3295_s29 + $0x4d0] sm:$0xff] }
  0x87   : > { %1953 = vmatpush1.bf16.msra.mxu1 %v2904_v40  ;;  %v289_v40 = vld [vmem:[%s3295_s29 + $0xf0] sm:$0xff] }
  0x88   : > { %1954 = vmatprep.subr.bf16.mxu1 %v2913_v42  ;;  %v417_v42 = vld [vmem:[%s3295_s29 + $0x4f0] sm:$0xff]  ;;  %v2723_v45 = vcombine.high %v285_v39, %v289_v40  ;;  %v2722_v51 = vcombine.low %v285_v39, %v289_v40 }
  0x89   : > { %1914 = vmatpush1.bf16.msra.mxu0 %v2784_v47  ;;  %v2851_v46 = vcombine.high %v413_v41, %v417_v42  ;;  %v293_v47 = vld [vmem:[%s3295_s29 + $0x110] sm:$0xff]  ;;  %v2850_v52 = vcombine.low %v413_v41, %v417_v42 }
  0x8a   : > { %1915 = vmatprep.subr.bf16.mxu0 %v2793_v49  ;;  %v421_v49 = vld [vmem:[%s3295_s29 + $0x510] sm:$0xff] }
  0x8b   : > { %1955 = vmatpush1.bf16.msra.mxu1 %v2912_v48  ;;  %v297_v48 = vld [vmem:[%s3295_s29 + $0x130] sm:$0xff] }
  0x8c   : > { %1956 = vmatprep.subr.bf16.mxu1 %v2921_v50  ;;  %v425_v50 = vld [vmem:[%s3295_s29 + $0x530] sm:$0xff]  ;;  %v2731_v53 = vcombine.high %v293_v47, %v297_v48  ;;  %v2730_v63 = vcombine.low %v293_v47, %v297_v48 }
  0x8d   : > { %1916 = vmatpush1.bf16.msra.mxu0 %v2792_v57  ;;  %v2859_v56 = vcombine.high %v421_v49, %v425_v50  ;;  %v301_v57 = vld [vmem:[%s3295_s29 + $0x150] sm:$0xff]  ;;  %v2858_v0 = vcombine.low %v421_v49, %v425_v50 }
  0x8e   : > { %1917 = vmatprep.subr.bf16.mxu0 %v2801_v61  ;;  %v429_v61 = vld [vmem:[%s3295_s29 + $0x550] sm:$0xff] }
  0x8f   : > { %1957 = vmatpush1.bf16.msra.mxu1 %v2920_v58  ;;  %v305_v58 = vld [vmem:[%s3295_s29 + $0x170] sm:$0xff] }
  0x90   : > { %1958 = vmatprep.subr.bf16.mxu1 %v2929_v62  ;;  %v433_v62 = vld [vmem:[%s3295_s29 + $0x570] sm:$0xff]  ;;  %v2739_v1 = vcombine.high %v301_v57, %v305_v58  ;;  %v2738_v7 = vcombine.low %v301_v57, %v305_v58 }
  0x91   : > { %1918 = vmatpush1.bf16.msra.mxu0 %v2800_v3  ;;  %v2867_v2 = vcombine.high %v429_v61, %v433_v62  ;;  %v309_v3 = vld [vmem:[%s3295_s29 + $0x190] sm:$0xff]  ;;  %v2866_v8 = vcombine.low %v429_v61, %v433_v62 }
  0x92   : > { %1919 = vmatprep.subr.bf16.mxu0 %v2809_v5  ;;  %v437_v5 = vld [vmem:[%s3295_s29 + $0x590] sm:$0xff] }
  0x93   : > { %1959 = vmatpush1.bf16.msra.mxu1 %v2928_v4  ;;  %v313_v4 = vld [vmem:[%s3295_s29 + $0x1b0] sm:$0xff] }
  0x94   : > { %1960 = vmatprep.subr.bf16.mxu1 %v2937_v6  ;;  %v441_v6 = vld [vmem:[%s3295_s29 + $0x5b0] sm:$0xff]  ;;  %v2747_v9 = vcombine.high %v309_v3, %v313_v4  ;;  %v2746_v15 = vcombine.low %v309_v3, %v313_v4 }
  0x95   : > { %1920 = vmatpush1.bf16.msra.mxu0 %v2808_v11  ;;  %v2875_v10 = vcombine.high %v437_v5, %v441_v6  ;;  %v317_v11 = vld [vmem:[%s3295_s29 + $0x1d0] sm:$0xff]  ;;  %v2874_v16 = vcombine.low %v437_v5, %v441_v6 }
  0x96   : > { %1921 = vmatprep.subr.bf16.mxu0 %v2817_v13  ;;  %v445_v13 = vld [vmem:[%s3295_s29 + $0x5d0] sm:$0xff] }
  0x97   : > { %1961 = vmatpush1.bf16.msra.mxu1 %v2936_v12  ;;  %v321_v12 = vld [vmem:[%s3295_s29 + $0x1f0] sm:$0xff] }
  0x98   : > { %1962 = vmatprep.subr.bf16.mxu1 %v2945_v14  ;;  %v449_v14 = vld [vmem:[%s3295_s29 + $0x5f0] sm:$0xff]  ;;  %v2755_v18 = vcombine.high %v317_v11, %v321_v12  ;;  %v2754_v25 = vcombine.low %v317_v11, %v321_v12 }
  0x99   : > { %1922 = vmatpush1.bf16.msra.mxu0 %v2816_v21  ;;  %v2883_v19 = vcombine.high %v445_v13, %v449_v14  ;;  %v325_v21 = vld [vmem:[%s3295_s29 + $0x210] sm:$0xff]  ;;  %v2882_v54 = vcombine.low %v445_v13, %v449_v14 }
  0x9a   : > { %1973 = vmatprep.subr.bf16.mxu0 %v2699_v23  ;;  %v453_v23 = vld [vmem:[%s3295_s29 + $0x610] sm:$0xff] }
  0x9b   : > { %1963 = vmatpush1.bf16.msra.mxu1 %v2944_v22  ;;  %v329_v22 = vld [vmem:[%s3295_s29 + $0x230] sm:$0xff] }
  0x9c   : > { %2014 = vmatprep.subr.bf16.mxu1 %v2827_v24  ;;  %1924 = vmatmul.mubr.bf16.vlgmr.msra.gmra.mrb[4].mxu0 %v3386_v17  ;;  %v457_v24 = vld [vmem:[%s3295_s29 + $0x630] sm:$0xff]  ;;  %v2763_v26 = vcombine.high %v325_v21, %v329_v22  ;;  %v2762_v31 = vcombine.low %v325_v21, %v329_v22 }
  0x9d   : > { %1974 = vmatpush1.bf16.msra.mxu0 %v2698_v55  ;;  %2005 = vmatprep.mubr.bf16.mxu0 %v3336_v59  ;;  %v2891_v27 = vcombine.high %v453_v23, %v457_v24  ;;  %v333_v55 = vld [vmem:[%s3295_s29 + $0x250] sm:$0xff]  ;;  %v2890_v32 = vcombine.low %v453_v23, %v457_v24 }
  0x9e   : > { %1965 = vmatmul.mubr.bf16.vlgmr.msra.gmra.mrb[4].mxu1 %v3392_v20  ;;  %1975 = vmatprep.subr.bf16.mxu0 %v2707_v29  ;;  %v461_v29 = vld [vmem:[%s3295_s29 + $0x650] sm:$0xff] }
  0x9f   : > { %2015 = vmatpush1.bf16.msra.mxu1 %v2826_v28  ;;  %2046 = vmatprep.mubr.bf16.mxu1 %v3340_v60  ;;  %v337_v28 = vld [vmem:[%s3295_s29 + $0x270] sm:$0xff] }
  0xa0   : > { %2016 = vmatprep.subr.bf16.mxu1 %v2835_v30  ;;  %v465_v30 = vld [vmem:[%s3295_s29 + $0x670] sm:$0xff]  ;;  %v2771_v33 = vcombine.high %v333_v55, %v337_v28  ;;  %v2770_v39 = vcombine.low %v333_v55, %v337_v28 }
  0xa1   : > { %1976 = vmatpush1.bf16.msra.mxu0 %v2706_v35  ;;  %v2899_v34 = vcombine.high %v461_v29, %v465_v30  ;;  %v341_v35 = vld [vmem:[%s3295_s29 + $0x290] sm:$0xff]  ;;  %v2898_v40 = vcombine.low %v461_v29, %v465_v30 }
  0xa2   : > { %1977 = vmatprep.subr.bf16.mxu0 %v2715_v37  ;;  %v469_v37 = vld [vmem:[%s3295_s29 + $0x690] sm:$0xff] }
  0xa3   : > { %2017 = vmatpush1.bf16.msra.mxu1 %v2834_v36  ;;  %v345_v36 = vld [vmem:[%s3295_s29 + $0x2b0] sm:$0xff] }
  0xa4   : > { %2018 = vmatprep.subr.bf16.mxu1 %v2843_v38  ;;  %v473_v38 = vld [vmem:[%s3295_s29 + $0x6b0] sm:$0xff]  ;;  %v2779_v41 = vcombine.high %v341_v35, %v345_v36  ;;  %v2778_v47 = vcombine.low %v341_v35, %v345_v36 }
  0xa5   : > { %1978 = vmatpush1.bf16.msra.mxu0 %v2714_v43  ;;  %v2907_v42 = vcombine.high %v469_v37, %v473_v38  ;;  %v349_v43 = vld [vmem:[%s3295_s29 + $0x2d0] sm:$0xff]  ;;  %v2906_v48 = vcombine.low %v469_v37, %v473_v38 }
  0xa6   : > { %1979 = vmatprep.subr.bf16.mxu0 %v2723_v45  ;;  %v477_v45 = vld [vmem:[%s3295_s29 + $0x6d0] sm:$0xff] }
  0xa7   : > { %2019 = vmatpush1.bf16.msra.mxu1 %v2842_v44  ;;  %v353_v44 = vld [vmem:[%s3295_s29 + $0x2f0] sm:$0xff] }
  0xa8   : > { %2020 = vmatprep.subr.bf16.mxu1 %v2851_v46  ;;  %v481_v46 = vld [vmem:[%s3295_s29 + $0x6f0] sm:$0xff]  ;;  %v2787_v49 = vcombine.high %v349_v43, %v353_v44  ;;  %v2786_v57 = vcombine.low %v349_v43, %v353_v44 }
  0xa9   : > { %1980 = vmatpush1.bf16.msra.mxu0 %v2722_v51  ;;  %v2915_v50 = vcombine.high %v477_v45, %v481_v46  ;;  %v357_v51 = vld [vmem:[%s3295_s29 + $0x310] sm:$0xff]  ;;  %v2914_v58 = vcombine.low %v477_v45, %v481_v46 }
  0xaa   : > { %1981 = vmatprep.subr.bf16.mxu0 %v2731_v53  ;;  %v485_v53 = vld [vmem:[%s3295_s29 + $0x710] sm:$0xff] }
  0xab   : > { %2021 = vmatpush1.bf16.msra.mxu1 %v2850_v52  ;;  %v361_v52 = vld [vmem:[%s3295_s29 + $0x330] sm:$0xff] }
  0xac   : > { %2022 = vmatprep.subr.bf16.mxu1 %v2859_v56  ;;  %v489_v56 = vld [vmem:[%s3295_s29 + $0x730] sm:$0xff]  ;;  %v2795_v61 = vcombine.high %v357_v51, %v361_v52  ;;  %v2794_v3 = vcombine.low %v357_v51, %v361_v52 }
  0xad   : > { %1982 = vmatpush1.bf16.msra.mxu0 %v2730_v63  ;;  %v2923_v62 = vcombine.high %v485_v53, %v489_v56  ;;  %v365_v63 = vld [vmem:[%s3295_s29 + $0x350] sm:$0xff]  ;;  %v2922_v4 = vcombine.low %v485_v53, %v489_v56 }
  0xae   : > { %1983 = vmatprep.subr.bf16.mxu0 %v2739_v1  ;;  %v493_v1 = vld [vmem:[%s3295_s29 + $0x750] sm:$0xff] }
  0xaf   : > { %2023 = vmatpush1.bf16.msra.mxu1 %v2858_v0  ;;  %v369_v0 = vld [vmem:[%s3295_s29 + $0x370] sm:$0xff] }
  0xb0   : > { %2024 = vmatprep.subr.bf16.mxu1 %v2867_v2  ;;  %v497_v2 = vld [vmem:[%s3295_s29 + $0x770] sm:$0xff]  ;;  %v2803_v5 = vcombine.high %v365_v63, %v369_v0  ;;  %v2802_v11 = vcombine.low %v365_v63, %v369_v0 }
  0xb1   : > { %1984 = vmatpush1.bf16.msra.mxu0 %v2738_v7  ;;  %v2931_v6 = vcombine.high %v493_v1, %v497_v2  ;;  %v373_v7 = vld [vmem:[%s3295_s29 + $0x390] sm:$0xff]  ;;  %v2930_v12 = vcombine.low %v493_v1, %v497_v2  ;;  %v302_v1 = vld [vmem:[%s3295_s29 + $0x158] sm:$0xff] }
  0xb2   : > { %1985 = vmatprep.subr.bf16.mxu0 %v2747_v9  ;;  %v501_v9 = vld [vmem:[%s3295_s29 + $0x790] sm:$0xff]  ;;  %v306_v2 = vld [vmem:[%s3295_s29 + $0x178] sm:$0xff] }
  0xb3   : > { %2025 = vmatpush1.bf16.msra.mxu1 %v2866_v8  ;;  %v377_v8 = vld [vmem:[%s3295_s29 + $0x3b0] sm:$0xff] }
  0xb4   : > { %2026 = vmatprep.subr.bf16.mxu1 %v2875_v10  ;;  %v505_v10 = vld [vmem:[%s3295_s29 + $0x7b0] sm:$0xff]  ;;  %v2811_v13 = vcombine.high %v373_v7, %v377_v8  ;;  %v2810_v21 = vcombine.low %v373_v7, %v377_v8  ;;  %v2741_v7 = vcombine.high %v302_v1, %v306_v2 }
  0xb5   : > { %1986 = vmatpush1.bf16.msra.mxu0 %v2746_v15  ;;  %v2939_v14 = vcombine.high %v501_v9, %v505_v10  ;;  %v381_v15 = vld [vmem:[%s3295_s29 + $0x3d0] sm:$0xff]  ;;  %v2938_v22 = vcombine.low %v501_v9, %v505_v10  ;;  %v310_v9 = vld [vmem:[%s3295_s29 + $0x198] sm:$0xff] }
  0xb6   : > { %1987 = vmatprep.subr.bf16.mxu0 %v2755_v18  ;;  %v509_v18 = vld [vmem:[%s3295_s29 + $0x7d0] sm:$0xff]  ;;  %v314_v10 = vld [vmem:[%s3295_s29 + $0x1b8] sm:$0xff] }
  0xb7   : > { %2027 = vmatpush1.bf16.msra.mxu1 %v2874_v16  ;;  %v385_v16 = vld [vmem:[%s3295_s29 + $0x3f0] sm:$0xff] }
  0xb8   : > { %2028 = vmatprep.subr.bf16.mxu1 %v2883_v19  ;;  %v513_v19 = vld [vmem:[%s3295_s29 + $0x7f0] sm:$0xff]  ;;  %v2819_v23 = vcombine.high %v381_v15, %v385_v16  ;;  %v2818_v55 = vcombine.low %v381_v15, %v385_v16  ;;  %v2749_v15 = vcombine.high %v310_v9, %v314_v10 }
  0xb9   : > { %1988 = vmatpush1.bf16.msra.mxu0 %v2754_v25  ;;  %v2947_v24 = vcombine.high %v509_v18, %v513_v19  ;;  %v262_v25 = vld [vmem:[%s3295_s29 + $0x18] sm:$0xff]  ;;  %v2946_v28 = vcombine.low %v509_v18, %v513_v19 }
  0xba   : > { %1989 = vmatprep.subr.bf16.mxu0 %v2763_v26  ;;  %v390_v26 = vld [vmem:[%s3295_s29 + $0x418] sm:$0xff] }
  0xbb   : > { %2029 = vmatpush1.bf16.msra.mxu1 %v2882_v54  ;;  %v266_v54 = vld [vmem:[%s3295_s29 + $0x38] sm:$0xff] }
  0xbc   : > { %2030 = vmatprep.subr.bf16.mxu1 %v2891_v27  ;;  %v394_v27 = vld [vmem:[%s3295_s29 + $0x438] sm:$0xff]  ;;  %v2701_v29 = vcombine.high %v262_v25, %v266_v54  ;;  %v2700_v35 = vcombine.low %v262_v25, %v266_v54 }
  0xbd   : > { %1990 = vmatpush1.bf16.msra.mxu0 %v2762_v31  ;;  %v2829_v30 = vcombine.high %v390_v26, %v394_v27  ;;  %v270_v31 = vld [vmem:[%s3295_s29 + $0x58] sm:$0xff]  ;;  %v2828_v36 = vcombine.low %v390_v26, %v394_v27 }
  0xbe   : > { %1991 = vmatprep.subr.bf16.mxu0 %v2771_v33  ;;  %v398_v33 = vld [vmem:[%s3295_s29 + $0x458] sm:$0xff] }
  0xbf   : > { %2031 = vmatpush1.bf16.msra.mxu1 %v2890_v32  ;;  %v274_v32 = vld [vmem:[%s3295_s29 + $0x78] sm:$0xff] }
  0xc0   : > { %2032 = vmatprep.subr.bf16.mxu1 %v2899_v34  ;;  %v402_v34 = vld [vmem:[%s3295_s29 + $0x478] sm:$0xff]  ;;  %v2709_v37 = vcombine.high %v270_v31, %v274_v32  ;;  %v2708_v43 = vcombine.low %v270_v31, %v274_v32 }
  0xc1   : > { %1992 = vmatpush1.bf16.msra.mxu0 %v2770_v39  ;;  %v2837_v38 = vcombine.high %v398_v33, %v402_v34  ;;  %v278_v39 = vld [vmem:[%s3295_s29 + $0x98] sm:$0xff]  ;;  %v2836_v44 = vcombine.low %v398_v33, %v402_v34 }
  0xc2   : > { %1993 = vmatprep.subr.bf16.mxu0 %v2779_v41  ;;  %v406_v41 = vld [vmem:[%s3295_s29 + $0x498] sm:$0xff] }
  0xc3   : > { %2033 = vmatpush1.bf16.msra.mxu1 %v2898_v40  ;;  %v282_v40 = vld [vmem:[%s3295_s29 + $0xb8] sm:$0xff] }
  0xc4   : > { %2034 = vmatprep.subr.bf16.mxu1 %v2907_v42  ;;  %v410_v42 = vld [vmem:[%s3295_s29 + $0x4b8] sm:$0xff]  ;;  %v2717_v45 = vcombine.high %v278_v39, %v282_v40  ;;  %v2716_v51 = vcombine.low %v278_v39, %v282_v40 }
  0xc5   : > { %1994 = vmatpush1.bf16.msra.mxu0 %v2778_v47  ;;  %v2845_v46 = vcombine.high %v406_v41, %v410_v42  ;;  %v286_v47 = vld [vmem:[%s3295_s29 + $0xd8] sm:$0xff]  ;;  %v2844_v52 = vcombine.low %v406_v41, %v410_v42 }
  0xc6   : > { %1995 = vmatprep.subr.bf16.mxu0 %v2787_v49  ;;  %v414_v49 = vld [vmem:[%s3295_s29 + $0x4d8] sm:$0xff] }
  0xc7   : > { %2035 = vmatpush1.bf16.msra.mxu1 %v2906_v48  ;;  %v290_v48 = vld [vmem:[%s3295_s29 + $0xf8] sm:$0xff] }
  0xc8   : > { %2036 = vmatprep.subr.bf16.mxu1 %v2915_v50  ;;  %v418_v50 = vld [vmem:[%s3295_s29 + $0x4f8] sm:$0xff]  ;;  %v2725_v53 = vcombine.high %v286_v47, %v290_v48 }
  0xc9   : > { %1996 = vmatpush1.bf16.msra.mxu0 %v2786_v57  ;;  %v2853_v56 = vcombine.high %v414_v49, %v418_v50  ;;  %v294_v57 = vld [vmem:[%s3295_s29 + $0x118] sm:$0xff] }
  0xca   : > { %1997 = vmatprep.subr.bf16.mxu0 %v2795_v61  ;;  %v422_v61 = vld [vmem:[%s3295_s29 + $0x518] sm:$0xff] }
  0xcb   : > { %2037 = vmatpush1.bf16.msra.mxu1 %v2914_v58  ;;  %v298_v58 = vld [vmem:[%s3295_s29 + $0x138] sm:$0xff] }
  0xcc   : > { %2038 = vmatprep.subr.bf16.mxu1 %v2923_v62  ;;  %v2724_v62 = vcombine.low %v286_v47, %v290_v48  ;;  %v2733_v63 = vcombine.high %v294_v57, %v298_v58  ;;  %v318_v18 = vld [vmem:[%s3295_s29 + $0x1d8] sm:$0xff] }
  0xcd   : > { %1998 = vmatpush1.bf16.msra.mxu0 %v2794_v3  ;;  %v430_v3 = vld [vmem:[%s3295_s29 + $0x558] sm:$0xff] }
  0xce   : > { %1999 = vmatprep.subr.bf16.mxu0 %v2803_v5  ;;  %v2732_v5 = vcombine.low %v294_v57, %v298_v58  ;;  %v322_v19 = vld [vmem:[%s3295_s29 + $0x1f8] sm:$0xff] }
  0xcf   : > { %2039 = vmatpush1.bf16.msra.mxu1 %v2922_v4  ;;  %v434_v4 = vld [vmem:[%s3295_s29 + $0x578] sm:$0xff]  ;;  %v2757_v25 = vcombine.high %v318_v18, %v322_v19 }
  0xd0   : > { %2040 = vmatprep.subr.bf16.mxu1 %v2931_v6  ;;  %v2869_v8 = vcombine.high %v430_v3, %v434_v4  ;;  %v326_v26 = vld [vmem:[%s3295_s29 + $0x218] sm:$0xff] }
  0xd1   : > { %2000 = vmatpush1.bf16.msra.mxu0 %v2802_v11  ;;  %v438_v11 = vld [vmem:[%s3295_s29 + $0x598] sm:$0xff] }
  0xd2   : > { %2001 = vmatprep.subr.bf16.mxu0 %v2811_v13  ;;  %v2740_v13 = vcombine.low %v302_v1, %v306_v2  ;;  %v330_v27 = vld [vmem:[%s3295_s29 + $0x238] sm:$0xff] }
  0xd3   : > { %2041 = vmatpush1.bf16.msra.mxu1 %v2930_v12  ;;  %v442_v12 = vld [vmem:[%s3295_s29 + $0x5b8] sm:$0xff]  ;;  %v2765_v31 = vcombine.high %v326_v26, %v330_v27 }
  0xd4   : > { %2042 = vmatprep.subr.bf16.mxu1 %v2939_v14  ;;  %v2868_v14 = vcombine.low %v430_v3, %v434_v4  ;;  %v2877_v16 = vcombine.high %v438_v11, %v442_v12  ;;  %v334_v33 = vld [vmem:[%s3295_s29 + $0x258] sm:$0xff] }
  0xd5   : > { %2002 = vmatpush1.bf16.msra.mxu0 %v2810_v21  ;;  %v446_v21 = vld [vmem:[%s3295_s29 + $0x5d8] sm:$0xff] }
  0xd6   : > { %2003 = vmatprep.subr.bf16.mxu0 %v2819_v23  ;;  %v2748_v23 = vcombine.low %v310_v9, %v314_v10  ;;  %v338_v34 = vld [vmem:[%s3295_s29 + $0x278] sm:$0xff] }
  0xd7   : > { %2043 = vmatpush1.bf16.msra.mxu1 %v2938_v22  ;;  %v450_v22 = vld [vmem:[%s3295_s29 + $0x5f8] sm:$0xff]  ;;  %v2773_v39 = vcombine.high %v334_v33, %v338_v34 }
  0xd8   : > { %2044 = vmatprep.subr.bf16.mxu1 %v2947_v24  ;;  %v2876_v24 = vcombine.low %v438_v11, %v442_v12  ;;  %v2885_v54 = vcombine.high %v446_v21, %v450_v22  ;;  %v342_v41 = vld [vmem:[%s3295_s29 + $0x298] sm:$0xff] }
  0xd9   : > { %2004 = vmatpush1.bf16.msra.mxu0 %v2818_v55  ;;  %v454_v55 = vld [vmem:[%s3295_s29 + $0x618] sm:$0xff] }
  0xda   : > { %2055 = vmatprep.subr.bf16.mxu0 %v2701_v29  ;;  %v2756_v29 = vcombine.low %v318_v18, %v322_v19  ;;  %v346_v42 = vld [vmem:[%s3295_s29 + $0x2b8] sm:$0xff] }
  0xdb   : > { %2045 = vmatpush1.bf16.msra.mxu1 %v2946_v28  ;;  %v458_v28 = vld [vmem:[%s3295_s29 + $0x638] sm:$0xff]  ;;  %v2781_v47 = vcombine.high %v342_v41, %v346_v42 }
  0xdc   : > { %2096 = vmatprep.subr.bf16.mxu1 %v2829_v30  ;;  %2006 = vmatmul.mubr.bf16.vlgmr.msra.gmra.mrb[8].mxu0 %v3386_v17  ;;  %v2884_v30 = vcombine.low %v446_v21, %v450_v22  ;;  %v2893_v32 = vcombine.high %v454_v55, %v458_v28  ;;  %v366_v3 = vld [vmem:[%s3295_s29 + $0x358] sm:$0xff] }
  0xdd   : > { %2056 = vmatpush1.bf16.msra.mxu0 %v2700_v35  ;;  %2087 = vmatprep.mubr.bf16.mxu0 %v3336_v59  ;;  %v426_v59 = vld [vmem:[%s3295_s29 + $0x538] sm:$0xff] }
  0xde   : > { %2047 = vmatmul.mubr.bf16.vlgmr.msra.gmra.mrb[8].mxu1 %v3392_v20  ;;  %2057 = vmatprep.subr.bf16.mxu0 %v2709_v37  ;;  %v2861_v0 = vcombine.high %v422_v61, %v426_v59  ;;  %v2860_v6 = vcombine.low %v422_v61, %v426_v59  ;;  %v462_v35 = vld [vmem:[%s3295_s29 + $0x658] sm:$0xff]  ;;  %v2764_v37 = vcombine.low %v326_v26, %v330_v27 }
  0xdf   : > { %2097 = vmatpush1.bf16.msra.mxu1 %v2828_v36  ;;  %2128 = vmatprep.mubr.bf16.mxu1 %v3340_v60  ;;  %v2852_v60 = vcombine.low %v414_v49, %v418_v50  ;;  %v466_v36 = vld [vmem:[%s3295_s29 + $0x678] sm:$0xff] }
  0xe0   : > { %2098 = vmatprep.subr.bf16.mxu1 %v2837_v38  ;;  %v2892_v38 = vcombine.low %v454_v55, %v458_v28  ;;  %v2901_v40 = vcombine.high %v462_v35, %v466_v36  ;;  %v350_v49 = vld [vmem:[%s3295_s29 + $0x2d8] sm:$0xff] }
  0xe1   : > { %2058 = vmatpush1.bf16.msra.mxu0 %v2708_v43  ;;  %v470_v43 = vld [vmem:[%s3295_s29 + $0x698] sm:$0xff] }
  0xe2   : > { %2059 = vmatprep.subr.bf16.mxu0 %v2717_v45  ;;  %v2772_v45 = vcombine.low %v334_v33, %v338_v34  ;;  %v354_v50 = vld [vmem:[%s3295_s29 + $0x2f8] sm:$0xff]  ;;  %v250_v34 = vld [vmem:[#allocation2 + $0x8] sm:$0xff] }
  0xe3   : > { %2099 = vmatpush1.bf16.msra.mxu1 %v2836_v44  ;;  %v474_v44 = vld [vmem:[%s3295_s29 + $0x6b8] sm:$0xff]  ;;  %v2789_v57 = vcombine.high %v350_v49, %v354_v50 }
  0xe4   : > { %2100 = vmatprep.subr.bf16.mxu1 %v2845_v46  ;;  %v2900_v46 = vcombine.low %v462_v35, %v466_v36  ;;  %v2909_v48 = vcombine.high %v470_v43, %v474_v44  ;;  %v358_v61 = vld [vmem:[%s3295_s29 + $0x318] sm:$0xff] }
  0xe5   : > { %2060 = vmatpush1.bf16.msra.mxu0 %v2716_v51  ;;  %v478_v51 = vld [vmem:[%s3295_s29 + $0x6d8] sm:$0xff] }
  0xe6   : > { %2061 = vmatprep.subr.bf16.mxu0 %v2725_v53  ;;  %v2780_v53 = vcombine.low %v342_v41, %v346_v42  ;;  %v362_v59 = vld [vmem:[%s3295_s29 + $0x338] sm:$0xff] }
  0xe7   : > { %2101 = vmatpush1.bf16.msra.mxu1 %v2844_v52  ;;  %v482_v52 = vld [vmem:[%s3295_s29 + $0x6f8] sm:$0xff]  ;;  %v2797_v1 = vcombine.high %v358_v61, %v362_v59 }
  0xe8   : > { %2102 = vmatprep.subr.bf16.mxu1 %v2853_v56  ;;  %v2908_v56 = vcombine.low %v470_v43, %v474_v44  ;;  %v2917_v58 = vcombine.high %v478_v51, %v482_v52  ;;  %v370_v4 = vld [vmem:[%s3295_s29 + $0x378] sm:$0xff] }
  0xe9   : > { %2062 = vmatpush1.bf16.msra.mxu0 %v2724_v62  ;;  %v486_v62 = vld [vmem:[%s3295_s29 + $0x718] sm:$0xff]  ;;  %v2805_v9 = vcombine.high %v366_v3, %v370_v4 }
  0xea   : > { %2063 = vmatprep.subr.bf16.mxu0 %v2733_v63  ;;  %v2788_v63 = vcombine.low %v350_v49, %v354_v50  ;;  %v374_v11 = vld [vmem:[%s3295_s29 + $0x398] sm:$0xff] }
  0xeb   : > { %2103 = vmatpush1.bf16.msra.mxu1 %v2852_v60  ;;  %v490_v60 = vld [vmem:[%s3295_s29 + $0x738] sm:$0xff] }
  0xec   : > { %2104 = vmatprep.subr.bf16.mxu1 %v2861_v0  ;;  %v2916_v0 = vcombine.low %v478_v51, %v482_v52  ;;  %v2925_v2 = vcombine.high %v486_v62, %v490_v60  ;;  %v378_v12 = vld [vmem:[%s3295_s29 + $0x3b8] sm:$0xff] }
  0xed   : > { %2064 = vmatpush1.bf16.msra.mxu0 %v2732_v5  ;;  %v494_v5 = vld [vmem:[%s3295_s29 + $0x758] sm:$0xff]  ;;  %v2813_v18 = vcombine.high %v374_v11, %v378_v12 }
  0xee   : > { %2065 = vmatprep.subr.bf16.mxu0 %v2741_v7  ;;  %v2796_v7 = vcombine.low %v358_v61, %v362_v59  ;;  %v382_v21 = vld [vmem:[%s3295_s29 + $0x3d8] sm:$0xff] }
  0xef   : > { %2105 = vmatpush1.bf16.msra.mxu1 %v2860_v6  ;;  %v498_v6 = vld [vmem:[%s3295_s29 + $0x778] sm:$0xff] }
  0xf0   : > { %2106 = vmatprep.subr.bf16.mxu1 %v2869_v8  ;;  %v2924_v8 = vcombine.low %v486_v62, %v490_v60  ;;  %v2933_v10 = vcombine.high %v494_v5, %v498_v6  ;;  %v386_v22 = vld [vmem:[%s3295_s29 + $0x3f8] sm:$0xff]  ;;  %v254_v60 = vld [vmem:[#allocation2 + $0x28] sm:$0xff] }
  0xf1   : > { %2066 = vmatpush1.bf16.msra.mxu0 %v2740_v13  ;;  %v502_v13 = vld [vmem:[%s3295_s29 + $0x798] sm:$0xff]  ;;  %v2821_v26 = vcombine.high %v382_v21, %v386_v22  ;;  %v2820_v55 = vcombine.low %v382_v21, %v386_v22 }
  0xf2   : > { %2067 = vmatprep.subr.bf16.mxu0 %v2749_v15  ;;  %v2804_v15 = vcombine.low %v366_v3, %v370_v4 }
  0xf3   : > { %2107 = vmatpush1.bf16.msra.mxu1 %v2868_v14  ;;  %v506_v14 = vld [vmem:[%s3295_s29 + $0x7b8] sm:$0xff] }
  0xf4   : > { %2108 = vmatprep.subr.bf16.mxu1 %v2877_v16  ;;  %v2932_v16 = vcombine.low %v494_v5, %v498_v6  ;;  %v2941_v19 = vcombine.high %v502_v13, %v506_v14 }
  0xf5   : > { %2068 = vmatpush1.bf16.msra.mxu0 %v2748_v23  ;;  %v510_v23 = vld [vmem:[%s3295_s29 + $0x7d8] sm:$0xff] }
  0xf6   : > { %2069 = vmatprep.subr.bf16.mxu0 %v2757_v25  ;;  %v2812_v25 = vcombine.low %v374_v11, %v378_v12  ;;  %v256_v12 = vld [vmem:[#allocation2 + $0x38] sm:$0xff] }
  0xf7   : > { %2109 = vmatpush1.bf16.msra.mxu1 %v2876_v24  ;;  %v514_v24 = vld [vmem:[%s3295_s29 + $0x7f8] sm:$0xff] }
  0xf8   : > { %2110 = vmatprep.subr.bf16.mxu1 %v2885_v54  ;;  %v2940_v54 = vcombine.low %v502_v13, %v506_v14  ;;  %v2949_v27 = vcombine.high %v510_v23, %v514_v24  ;;  %v2948_v28 = vcombine.low %v510_v23, %v514_v24  ;;  %v2239_v23 = vld [vmem:[%s4012_s3 + $0x80] sm:$0xff] (!%p2950_p6)  ;;  %v2240_v24 = vld [vmem:[%s4012_s3 + $0x88] sm:$0xff] (!%p2950_p6) }
  0xf9   : > { %2070 = vmatpush1.bf16.msra.mxu0 %v2756_v29 }
  0xfa   : > { %2071 = vmatprep.subr.bf16.mxu0 %v2765_v31 }
  0xfb   : > { %2111 = vmatpush1.bf16.msra.mxu1 %v2884_v30  ;;  %v249_v30 = vld [vmem:[#allocation2] sm:$0xff] }
  0xfc   : > { %2112 = vmatprep.subr.bf16.mxu1 %v2893_v32 }
  0xfd   : > { %2072 = vmatpush1.bf16.msra.mxu0 %v2764_v37 }
  0xfe   : > { %2073 = vmatprep.subr.bf16.mxu0 %v2773_v39 }
  0xff   : > { %2113 = vmatpush1.bf16.msra.mxu1 %v2892_v38 }
 0x100   : > { %2114 = vmatprep.subr.bf16.mxu1 %v2901_v40 }
 0x101   : > { %2074 = vmatpush1.bf16.msra.mxu0 %v2772_v45 }
 0x102   : > { %2075 = vmatprep.subr.bf16.mxu0 %v2781_v47 }
 0x103   : > { %2115 = vmatpush1.bf16.msra.mxu1 %v2900_v46  ;;  %v252_v46 = vld [vmem:[#allocation2 + $0x18] sm:$0xff] }
 0x104   : > { %2116 = vmatprep.subr.bf16.mxu1 %v2909_v48 }
 0x105   : > { %2076 = vmatpush1.bf16.msra.mxu0 %v2780_v53 }
 0x106   : > { %2077 = vmatprep.subr.bf16.mxu0 %v2789_v57 }
 0x107   : > { %2117 = vmatpush1.bf16.msra.mxu1 %v2908_v56 }
 0x108   : > { %2118 = vmatprep.subr.bf16.mxu1 %v2917_v58  ;;  %v253_v58 = vld [vmem:[#allocation2 + $0x20] sm:$0xff] }
 0x109   : > { %2078 = vmatpush1.bf16.msra.mxu0 %v2788_v63 }
 0x10a   : > { %2079 = vmatprep.subr.bf16.mxu0 %v2797_v1 }
 0x10b   : > { %2119 = vmatpush1.bf16.msra.mxu1 %v2916_v0 }
 0x10c   : > { %2120 = vmatprep.subr.bf16.mxu1 %v2925_v2 }
 0x10d   : > { %2080 = vmatpush1.bf16.msra.mxu0 %v2796_v7 }
 0x10e   : > { %2081 = vmatprep.subr.bf16.mxu0 %v2805_v9 }
 0x10f   : > { %2121 = vmatpush1.bf16.msra.mxu1 %v2924_v8  ;;  %v255_v8 = vld [vmem:[#allocation2 + $0x30] sm:$0xff] }
 0x110   : > { %2122 = vmatprep.subr.bf16.mxu1 %v2933_v10 }
 0x111   : > { %2082 = vmatpush1.bf16.msra.mxu0 %v2804_v15 }
 0x112   : > { %2083 = vmatprep.subr.bf16.mxu0 %v2813_v18 }
 0x113   : > { %2123 = vmatpush1.bf16.msra.mxu1 %v2932_v16 }
 0x114   : > { %2124 = vmatprep.subr.bf16.mxu1 %v2941_v19 }
 0x115   : > { %2084 = vmatpush1.bf16.msra.mxu0 %v2812_v25  ;;  %v2223_v25 = vld [vmem:[%s4012_s3] sm:$0xff] (!%p2950_p6) }
 0x116   : > { %2085 = vmatprep.subr.bf16.mxu0 %v2821_v26  ;;  %v2224_v26 = vld [vmem:[%s4012_s3 + $0x8] sm:$0xff] (!%p2950_p6) }
 0x117   : > { %2125 = vmatpush1.bf16.msra.mxu1 %v2940_v54  ;;  %v3095_v54 = vpack.c.bf16 (!%p2950_p6), %v2240_v24, %v2239_v23 }
 0x118   : > { %2126 = vmatprep.subr.bf16.mxu1 %v2949_v27  ;;  %v2271_v27 = vld [vmem:[%s4012_s3 + $0x180] sm:$0xff] (!%p2950_p6) }
 0x119   : > { %2086 = vmatpush1.bf16.msra.mxu0 %v2820_v55  ;;  %v2272_v55 = vld [vmem:[%s4012_s3 + $0x188] sm:$0xff] (!%p2950_p6) }
 0x11a   : > { %3096 = vmatprep.subr.bf16.mxu0 (!%p2950_p6), %v3095_v54  ;;  %v2233_v54 = vld [vmem:[%s4012_s3 + $0x50] sm:$0xff] (!%p2950_p6) }
 0x11b   : > { %2127 = vmatpush1.bf16.msra.mxu1 %v2948_v28  ;;  %v3097_v28 = vpack.c.bf16 (!%p2950_p6), %v2224_v26, %v2223_v25  ;;  %v2234_v26 = vld [vmem:[%s4012_s3 + $0x58] sm:$0xff] (!%p2950_p6) }
 0x11c   : > { %2088 = vmatmul.mubr.bf16.vlgmr.msra.gmra.mrb[12].mxu0 %v3386_v17  ;;  %v251_v17 = vld [vmem:[#allocation2 + $0x10] sm:$0xff] }
 0x11d   : > { %3098 = vmatpush3.bf16.msra.mxu0 (!%p2950_p6), %v3097_v28  ;;  %v2266_v28 = vld [vmem:[%s4012_s3 + $0x158] sm:$0xff] (!%p2950_p6) }
 0x11e   : > { %2129 = vmatmul.mubr.bf16.vlgmr.msra.gmra.mrb[12].mxu1 %v3392_v20 }
 0x12f   : > { %v1843_v29 = vpop.f32.mrb[0].mxu0 }
 0x130   : > { %v1845_v32 = vpop.f32.mrb[1].mxu0 }
 0x131   : > { %v1884_v31 = vpop.f32.mrb[0].mxu1  ;;  %v1847_v36 = vpop.f32.mrb[2].mxu0 }
 0x132   : > { %v1885_v33 = vadd.f32 %v1884_v31, %v1843_v29  ;;  %v1886_v35 = vpop.f32.mrb[1].mxu1  ;;  %v1848_v39 = vpop.f32.mrb[3].mxu0  ;;  %v3127_v29 = vpack.c.bf16 (!%p2950_p6), %v2272_v55, %v2271_v27  ;;  %v2256_v31 = vld [vmem:[%s4012_s3 + $0x108] sm:$0xff] (!%p2950_p6)  ;;  %v2226_v36 = vld [vmem:[%s4012_s3 + $0x18] sm:$0xff] (!%p2950_p6)  ;;  %v2265_v27 = vld [vmem:[%s4012_s3 + $0x150] sm:$0xff] (!%p2950_p6) }
 0x133   : > { %v1887_v37 = vadd.f32 %v1886_v35, %v1845_v32  ;;  %v1888_v38 = vpop.f32.mrb[2].mxu1  ;;  %v2241_v32 = vld [vmem:[%s4012_s3 + $0x90] sm:$0xff] (!%p2950_p6) }
 0x134   : > { %v2137_v40 = vadd.f32 %v1885_v33, %v249_v30  ;;  %v1889_v41 = vpop.f32.mrb[3].mxu1  ;;  %v2255_v30 = vld [vmem:[%s4012_s3 + $0x100] sm:$0xff] (!%p2950_p6)  ;;  %v2225_v35 = vld [vmem:[%s4012_s3 + $0x10] sm:$0xff] (!%p2950_p6)  ;;  %3128 = vmatprep.subr.bf16.mxu1 (!%p2950_p6), %v3127_v29 }
 0x135   : > { %v2138_v42 = vadd.f32 %v1887_v37, %v250_v34  ;;  %v3129_v33 = vpack.c.bf16 (!%p2950_p6), %v2256_v31, %v2255_v30  ;;  %v2242_v34 = vld [vmem:[%s4012_s3 + $0x98] sm:$0xff] (!%p2950_p6)  ;;  %v3101_v38 = vpack.c.bf16 (!%p2950_p6), %v2226_v36, %v2225_v35  ;;  %v2273_v39 = vld [vmem:[%s4012_s3 + $0x190] sm:$0xff] (!%p2950_p6)  ;;  %v2251_v29 = vld [vmem:[%s4012_s3 + $0xe0] sm:$0xff] (!%p2950_p6)  ;;  %v3117_v36 = vpack.c.bf16 (!%p2950_p6), %v2234_v26, %v2233_v54 }
 0x136   : > { %2145 = vst [vmem:[#allocation2] sm:$0xff] %v2137_v40  ;;  %v3099_v37 = vpack.c.bf16 (!%p2950_p6), %v2242_v34, %v2241_v32  ;;  %v2274_v40 = vld [vmem:[%s4012_s3 + $0x198] sm:$0xff] (!%p2950_p6)  ;;  %v2257_v41 = vld [vmem:[%s4012_s3 + $0x110] sm:$0xff] (!%p2950_p6)  ;;  %v2252_v30 = vld [vmem:[%s4012_s3 + $0xe8] sm:$0xff] (!%p2950_p6) }
 0x137   : > { %2146 = vst [vmem:[#allocation2 + $0x8] sm:$0xff] %v2138_v42  ;;  %3130 = vmatpush3.bf16.msra.mxu1 (!%p2950_p6), %v3129_v33  ;;  %v3131_v42 = vpack.c.bf16 (!%p2950_p6), %v2274_v40, %v2273_v39  ;;  %v2283_v33 = vld [vmem:[%s4012_s3 + $0x1e0] sm:$0xff] (!%p2950_p6)  ;;  %v2284_v34 = vld [vmem:[%s4012_s3 + $0x1e8] sm:$0xff] (!%p2950_p6)  ;;  %v3149_v40 = vpack.c.bf16 (!%p2950_p6), %v2266_v28, %v2265_v27  ;;  %v2337_v54 = vld [vmem:[%s4012_s3 + $0x390] sm:$0xff] (!%p2950_p6) }
 0x138   : > { %3100 = vmatprep.subr.bf16.mxu0 (!%p2950_p6), %v3099_v37  ;;  %v2235_v37 = vld [vmem:[%s4012_s3 + $0x60] sm:$0xff] (!%p2950_p6)  ;;  %v2338_v26 = vld [vmem:[%s4012_s3 + $0x398] sm:$0xff] (!%p2950_p6) }
 0x139   : > { %3132 = vmatprep.subr.bf16.mxu1 (!%p2950_p6), %v3131_v42  ;;  %3102 = vmatpush3.bf16.msra.mxu0 (!%p2950_p6), %v3101_v38  ;;  %v2236_v38 = vld [vmem:[%s4012_s3 + $0x68] sm:$0xff] (!%p2950_p6)  ;;  %v2267_v42 = vld [vmem:[%s4012_s3 + $0x160] sm:$0xff] (!%p2950_p6) }
 0x16f   : > { %v1925_v43 = vpop.f32.mrb[4].mxu0 }
 0x170   : > { %v1927_v20 = vpop.f32.mrb[5].mxu0 }
 0x171   : > { %v1966_v44 = vpop.f32.mrb[4].mxu1  ;;  %v1929_v48 = vpop.f32.mrb[6].mxu0 }
 0x172   : > { %v1967_v45 = vadd.f32 %v1966_v44, %v1925_v43  ;;  %v1968_v47 = vpop.f32.mrb[5].mxu1  ;;  %v1930_v51 = vpop.f32.mrb[7].mxu0  ;;  %v2258_v43 = vld [vmem:[%s4012_s3 + $0x118] sm:$0xff] (!%p2950_p6)  ;;  %v2244_v44 = vld [vmem:[%s4012_s3 + $0xa8] sm:$0xff] (!%p2950_p6)  ;;  %v2275_v48 = vld [vmem:[%s4012_s3 + $0x1a0] sm:$0xff] (!%p2950_p6) }
 0x173   : > { %v1969_v49 = vadd.f32 %v1968_v47, %v1927_v20  ;;  %v1970_v50 = vpop.f32.mrb[6].mxu1  ;;  %v3133_v20 = vpack.c.bf16 (!%p2950_p6), %v2258_v43, %v2257_v41  ;;  %v2228_v47 = vld [vmem:[%s4012_s3 + $0x28] sm:$0xff] (!%p2950_p6)  ;;  %v3119_v41 = vpack.c.bf16 (!%p2950_p6), %v2252_v30, %v2251_v29  ;;  %v2289_v30 = vld [vmem:[%s4012_s3 + $0x210] sm:$0xff] (!%p2950_p6) }
 0x174   : > { %v2139_v52 = vadd.f32 %v1967_v45, %v251_v17  ;;  %v1971_v53 = vpop.f32.mrb[7].mxu1  ;;  %v2243_v17 = vld [vmem:[%s4012_s3 + $0xa0] sm:$0xff] (!%p2950_p6)  ;;  %v2260_v51 = vld [vmem:[%s4012_s3 + $0x128] sm:$0xff] (!%p2950_p6) }
 0x175   : > { %v2140_v56 = vadd.f32 %v1969_v49, %v252_v46  ;;  %v3103_v45 = vpack.c.bf16 (!%p2950_p6), %v2244_v44, %v2243_v17  ;;  %v2227_v46 = vld [vmem:[%s4012_s3 + $0x20] sm:$0xff] (!%p2950_p6)  ;;  %v2276_v49 = vld [vmem:[%s4012_s3 + $0x1a8] sm:$0xff] (!%p2950_p6)  ;;  %3134 = vmatpush3.bf16.msra.mxu1 (!%p2950_p6), %v3133_v20  ;;  %v3151_v44 = vpack.c.bf16 (!%p2950_p6), %v2284_v34, %v2283_v33  ;;  %v3195_v33 = vpack.c.bf16 (!%p2950_p6), %v2338_v26, %v2337_v54  ;;  %v2322_v34 = vld [vmem:[%s4012_s3 + $0x318] sm:$0xff] (!%p2950_p6) }
 0x176   : > { %2147 = vst [vmem:[#allocation2 + $0x10] sm:$0xff] %v2139_v52  ;;  %v2259_v50 = vld [vmem:[%s4012_s3 + $0x120] sm:$0xff] (!%p2950_p6)  ;;  %v3105_v52 = vpack.c.bf16 (!%p2950_p6), %v2228_v47, %v2227_v46  ;;  %v3135_v53 = vpack.c.bf16 (!%p2950_p6), %v2276_v49, %v2275_v48  ;;  %v2158_v43 = vld [vmem:[#allocation2 + $0x8] sm:$0xff] (!%p2950_p6)  ;;  %v2254_v46 = vld [vmem:[%s4012_s3 + $0xf8] sm:$0xff] (!%p2950_p6) }
 0x177   : > { %2148 = vst [vmem:[#allocation2 + $0x18] sm:$0xff] %v2140_v56  ;;  %v2245_v56 = vld [vmem:[%s4012_s3 + $0xb0] sm:$0xff] (!%p2950_p6)  ;;  %3104 = vmatprep.subr.bf16.mxu0 (!%p2950_p6), %v3103_v45  ;;  %v3767_v17 = vld [vmem:[%s4011_s2] sm:$0xff] (!%p2950_p6)  ;;  %v2268_v20 = vld [vmem:[%s4012_s3 + $0x168] sm:$0xff] (!%p2950_p6) }
 0x178   : > { %3136 = vmatprep.subr.bf16.mxu1 (!%p2950_p6), %v3135_v53  ;;  %3106 = vmatpush3.bf16.msra.mxu0 (!%p2950_p6), %v3105_v52  ;;  %v2253_v45 = vld [vmem:[%s4012_s3 + $0xf0] sm:$0xff] (!%p2950_p6)  ;;  %v3121_v53 = vpack.c.bf16 (!%p2950_p6), %v2236_v38, %v2235_v37  ;;  %v2339_v37 = vld [vmem:[%s4012_s3 + $0x3a0] sm:$0xff] (!%p2950_p6)  ;;  %v2340_v38 = vld [vmem:[%s4012_s3 + $0x3a8] sm:$0xff] (!%p2950_p6) }
 0x179   : > { %v2285_v49 = vld [vmem:[%s4012_s3 + $0x1f0] sm:$0xff] (!%p2950_p6) }
 0x17e   : > { %v2160_v52 = vld [vmem:[#allocation2 + $0x18] sm:$0xff] (!%p2950_p6) }
 0x1af   : > { %v2007_v57 = vpop.f32.mrb[8].mxu0 }
 0x1b0   : > { %v2009_v59 = vpop.f32.mrb[9].mxu0 }
 0x1b1   : > { %v2048_v61 = vpop.f32.mrb[8].mxu1  ;;  %v2011_v0 = vpop.f32.mrb[10].mxu0 }
 0x1b2   : > { %v2049_v62 = vadd.f32 %v2048_v61, %v2007_v57  ;;  %v2050_v63 = vpop.f32.mrb[9].mxu1  ;;  %v2012_v3 = vpop.f32.mrb[11].mxu0  ;;  %v2246_v57 = vld [vmem:[%s4012_s3 + $0xb8] sm:$0xff] (!%p2950_p6)  ;;  %v3137_v61 = vpack.c.bf16 (!%p2950_p6), %v2260_v51, %v2259_v50 }
 0x1b3   : > { %v2051_v1 = vadd.f32 %v2050_v63, %v2009_v59  ;;  %v2052_v2 = vpop.f32.mrb[10].mxu1  ;;  %v3107_v59 = vpack.c.bf16 (!%p2950_p6), %v2246_v57, %v2245_v56  ;;  %v2278_v63 = vld [vmem:[%s4012_s3 + $0x1b8] sm:$0xff] (!%p2950_p6)  ;;  %v2247_v3 = vld [vmem:[%s4012_s3 + $0xc0] sm:$0xff] (!%p2950_p6)  ;;  %v2237_v56 = vld [vmem:[%s4012_s3 + $0x70] sm:$0xff] (!%p2950_p6) }
 0x1b4   : > { %v2141_v4 = vadd.f32 %v2049_v62, %v253_v58  ;;  %v2053_v5 = vpop.f32.mrb[11].mxu1  ;;  %v2229_v58 = vld [vmem:[%s4012_s3 + $0x30] sm:$0xff] (!%p2950_p6)  ;;  %v2230_v62 = vld [vmem:[%s4012_s3 + $0x38] sm:$0xff] (!%p2950_p6)  ;;  %3138 = vmatpush3.bf16.msra.mxu1 (!%p2950_p6), %v3137_v61 }
 0x1b5   : > { %v2142_v6 = vadd.f32 %v2051_v1, %v254_v60  ;;  %v2277_v60 = vld [vmem:[%s4012_s3 + $0x1b0] sm:$0xff] (!%p2950_p6)  ;;  %v2262_v2 = vld [vmem:[%s4012_s3 + $0x138] sm:$0xff] (!%p2950_p6)  ;;  %v2248_v5 = vld [vmem:[%s4012_s3 + $0xc8] sm:$0xff] (!%p2950_p6)  ;;  %3108 = vmatprep.subr.bf16.mxu0 (!%p2950_p6), %v3107_v59 }
 0x1b6   : > { %2149 = vst [vmem:[#allocation2 + $0x20] sm:$0xff] %v2141_v4  ;;  %v3139_v0 = vpack.c.bf16 (!%p2950_p6), %v2278_v63, %v2277_v60  ;;  %v2261_v1 = vld [vmem:[%s4012_s3 + $0x130] sm:$0xff] (!%p2950_p6)  ;;  %v2167_v4 = vlaneseq (!%p2950_p6)  ;;  %v2286_v50 = vld [vmem:[%s4012_s3 + $0x1f8] sm:$0xff] (!%p2950_p6)  ;;  %v3123_v60 = vpack.c.bf16 (!%p2950_p6), %v2254_v46, %v2253_v45  ;;  %v3199_v45 = vpack.c.bf16 (!%p2950_p6), %v2340_v38, %v2339_v37  ;;  %v2324_v46 = vld [vmem:[%s4012_s3 + $0x328] sm:$0xff] (!%p2950_p6) }
 0x1b7   : > { %2150 = vst [vmem:[#allocation2 + $0x28] sm:$0xff] %v2142_v6  ;;  %v3109_v6 = vpack.c.bf16 (!%p2950_p6), %v2230_v62, %v2229_v58  ;;  %v2157_v58 = vld [vmem:[#allocation2] sm:$0xff] (!%p2950_p6)  ;;  %v3153_v62 = vpack.c.bf16 (!%p2950_p6), %v2268_v20, %v2267_v42  ;;  %v2238_v63 = vld [vmem:[%s4012_s3 + $0x78] sm:$0xff] (!%p2950_p6) }
 0x1b8   : > { %3140 = vmatprep.subr.bf16.mxu1 (!%p2950_p6), %v3139_v0  ;;  %v2269_v0 = vld [vmem:[%s4012_s3 + $0x170] sm:$0xff] (!%p2950_p6)  ;;  %v2291_v42 = vld [vmem:[%s4012_s3 + $0x220] sm:$0xff] (!%p2950_p6) }
 0x1b9   : > { %3110 = vmatpush3.bf16.msra.mxu0 (!%p2950_p6), %v3109_v6  ;;  %v2304_v6 = vld [vmem:[%s4012_s3 + $0x288] sm:$0xff] (!%p2950_p6) }
 0x1ef   : > { %v2089_v7 = vpop.f32.mrb[12].mxu0 }
 0x1f0   : > { %v2091_v10 = vpop.f32.mrb[13].mxu0 }
 0x1f1   : > { %v2130_v9 = vpop.f32.mrb[12].mxu1  ;;  %v2093_v14 = vpop.f32.mrb[14].mxu0  ;;  %2156 = sbr.rel (%p2950_p6) target bundleno = 771 (0x303), region = 48 }
 0x1f2   : > { %v2131_v11 = vadd.f32 %v2130_v9, %v2089_v7  ;;  %v2132_v13 = vpop.f32.mrb[13].mxu1  ;;  %v2094_v18 = vpop.f32.mrb[15].mxu0  ;;  %v2279_v7 = vld [vmem:[%s4012_s3 + $0x1c0] sm:$0xff] (!%p2950_p6)  ;;  %v3141_v9 = vpack.c.bf16 (!%p2950_p6), %v2262_v2, %v2261_v1  ;;  %v2159_v1 = vld [vmem:[#allocation2 + $0x10] sm:$0xff] (!%p2950_p6)  ;;  %v3155_v2 = vpack.c.bf16 (!%p2950_p6), %v2286_v50, %v2285_v49 }
 0x1f3   : > { %v2133_v15 = vadd.f32 %v2132_v13, %v2091_v10  ;;  %v2134_v16 = vpop.f32.mrb[14].mxu1  ;;  %v3111_v10 = vpack.c.bf16 (!%p2950_p6), %v2248_v5, %v2247_v3  ;;  %v2263_v13 = vld [vmem:[%s4012_s3 + $0x140] sm:$0xff] (!%p2950_p6)  ;;  %v2250_v18 = vld [vmem:[%s4012_s3 + $0xd8] sm:$0xff] (!%p2950_p6)  ;;  %v2341_v50 = vld [vmem:[%s4012_s3 + $0x3b0] sm:$0xff] (!%p2950_p6) }
 0x1f4   : > { %v2143_v19 = vadd.f32 %v2131_v11, %v255_v8  ;;  %v2135_v21 = vpop.f32.mrb[15].mxu1  ;;  %v2280_v8 = vld [vmem:[%s4012_s3 + $0x1c8] sm:$0xff] (!%p2950_p6)  ;;  %v2231_v11 = vld [vmem:[%s4012_s3 + $0x40] sm:$0xff] (!%p2950_p6)  ;;  %v2249_v16 = vld [vmem:[%s4012_s3 + $0xd0] sm:$0xff] (!%p2950_p6)  ;;  %3142 = vmatpush3.bf16.msra.mxu1 (!%p2950_p6), %v3141_v9 }
 0x1f5   : > { %v2144_v22 = vadd.f32 %v2133_v15, %v256_v12  ;;  %v2232_v12 = vld [vmem:[%s4012_s3 + $0x48] sm:$0xff] (!%p2950_p6)  ;;  %v3143_v14 = vpack.c.bf16 (!%p2950_p6), %v2280_v8, %v2279_v7  ;;  %v2281_v21 = vld [vmem:[%s4012_s3 + $0x1d0] sm:$0xff] (!%p2950_p6)  ;;  %3112 = vmatprep.subr.bf16.mxu0 (!%p2950_p6), %v3111_v10  ;;  %v3115_v25 = vpack.c.bf16 (!%p2950_p6), %v2250_v18, %v2249_v16  ;;  %v2270_v3 = vld [vmem:[%s4012_s3 + $0x178] sm:$0xff] (!%p2950_p6) }
 0x1f6   : > { %2151 = vst [vmem:[#allocation2 + $0x30] sm:$0xff] %v2143_v19  ;;  %v2264_v15 = vld [vmem:[%s4012_s3 + $0x148] sm:$0xff] (!%p2950_p6)  ;;  %v3719_v19 = vshrl.u32 (!%p2950_p6), %v2167_v4, 7  ;;  %v3113_v23 = vpack.c.bf16 (!%p2950_p6), %v2232_v12, %v2231_v11  ;;  %v2303_v5 = vld [vmem:[%s4012_s3 + $0x280] sm:$0xff] (!%p2950_p6)  ;;  %v3125_v11 = vpack.c.bf16 (!%p2950_p6), %v2238_v63, %v2237_v56 }
 0x1f7   : > { %2152 = vst [vmem:[#allocation2 + $0x38] sm:$0xff] %v2144_v22  ;;  %v2282_v22 = vld [vmem:[%s4012_s3 + $0x1d8] sm:$0xff] (!%p2950_p6)  ;;  %v3145_v24 = vpack.c.bf16 (!%p2950_p6), %v2264_v15, %v2263_v13  ;;  %3144 = vmatprep.subr.bf16.mxu1 (!%p2950_p6), %v3143_v14  ;;  %v2335_v9 = vld [vmem:[%s4012_s3 + $0x380] sm:$0xff] (!%p2950_p6)  ;;  %v2336_v10 = vld [vmem:[%s4012_s3 + $0x388] sm:$0xff] (!%p2950_p6)  ;;  %v3157_v13 = vpack.c.bf16 (!%p2950_p6), %v2270_v3, %v2269_v0  ;;  %v3159_v14 = vpack.c.bf16 (!%p2950_p6), %v2304_v6, %v2303_v5 }
 0x1f8   : > { %v3147_v55 = vpack.c.bf16 %v2282_v22, %v2281_v21  ;;  %v2173_v31 = vsub.s32 1, %v3719_v19  ;;  %v2181_v32 = vsub.s32 3, %v3719_v19  ;;  %v2169_v35 = vsub.s32 0, %v3719_v19  ;;  %3114 = vmatpush3.bf16.msra.mxu0 %v3113_v23  ;;  %v2287_v15 = vld [vmem:[%s4012_s3 + $0x200] sm:$0xff]  ;;  %v2288_v16 = vld [vmem:[%s4012_s3 + $0x208] sm:$0xff]  ;;  %v2305_v23 = vld [vmem:[%s4012_s3 + $0x290] sm:$0xff] }
 0x1f9   : > { %v2177_v39 = vsub.s32 2, %v3719_v19  ;;  %3146 = vmatpush3.bf16.msra.mxu1 %v3145_v24  ;;  %3116 = vmatprep.subr.bf16.mxu0 %v3115_v25  ;;  %v2319_v18 = vld [vmem:[%s4012_s3 + $0x300] sm:$0xff]  ;;  %v3191_v21 = vpack.c.bf16 %v2336_v10, %v2335_v9  ;;  %v2320_v22 = vld [vmem:[%s4012_s3 + $0x308] sm:$0xff]  ;;  %v2306_v24 = vld [vmem:[%s4012_s3 + $0x298] sm:$0xff]  ;;  %v3161_v27 = vpack.c.bf16 %v2288_v16, %v2287_v15  ;;  %v2189_v20 = vsub.s32 5, %v3719_v19 }
 0x1fa   : > { %3148 = vmatprep.subr.bf16.mxu1 %v3147_v55  ;;  %v2174_v47 = vrot.slane %v3767_v17, %v2173_v31  ;;  %v2182_v48 = vrot.slane %v3767_v17, %v2181_v32  ;;  %v2170_v51 = vrot.slane %v3767_v17, %v2169_v35  ;;  %v3193_v28 = vpack.c.bf16 %v2320_v22, %v2319_v18  ;;  %v2290_v31 = vld [vmem:[%s4012_s3 + $0x218] sm:$0xff]  ;;  %v2321_v32 = vld [vmem:[%s4012_s3 + $0x310] sm:$0xff]  ;;  %v2307_v35 = vld [vmem:[%s4012_s3 + $0x2a0] sm:$0xff] }
 0x1fb   : > { %v2178_v59 = vrot.slane %v3767_v17, %v2177_v39  ;;  %v3163_v29 = vpack.c.bf16 %v2306_v24, %v2305_v23  ;;  %v3165_v39 = vpack.c.bf16 %v2290_v31, %v2289_v30  ;;  %v2197_v49 = vsub.s32 7, %v3719_v19  ;;  %v2311_v63 = vld [vmem:[%s4012_s3 + $0x2c0] sm:$0xff]  ;;  %v2312_v0 = vld [vmem:[%s4012_s3 + $0x2c8] sm:$0xff]  ;;  %v2313_v15 = vld [vmem:[%s4012_s3 + $0x2d0] sm:$0xff] }
 0x1fc   : > { %3118 = vmatpush3.bf16.msra.mxu0 %v3117_v36  ;;  %v2208_v57 = vadd.f32 %v2174_v47, %v2158_v43  ;;  %v2210_v61 = vadd.f32 %v2182_v48, %v2160_v52  ;;  %v2207_v8 = vadd.f32 %v2170_v51, %v2157_v58  ;;  %v2308_v36 = vld [vmem:[%s4012_s3 + $0x2a8] sm:$0xff]  ;;  %v2309_v47 = vld [vmem:[%s4012_s3 + $0x2b0] sm:$0xff]  ;;  %v2310_v48 = vld [vmem:[%s4012_s3 + $0x2b8] sm:$0xff]  ;;  %v2193_v37 = vsub.s32 6, %v3719_v19 }
 0x1fd   : > { %3150 = vmatpush3.bf16.msra.mxu1 %v3149_v40  ;;  %3120 = vmatprep.subr.bf16.mxu0 %v3119_v41  ;;  %v2209_v12 = vadd.f32 %v2178_v59, %v2159_v1  ;;  %v3197_v40 = vpack.c.bf16 %v2322_v34, %v2321_v32  ;;  %v3167_v41 = vpack.c.bf16 %v2308_v36, %v2307_v35  ;;  %v2292_v43 = vld [vmem:[%s4012_s3 + $0x228] sm:$0xff]  ;;  %v2342_v51 = vld [vmem:[%s4012_s3 + $0x3b8] sm:$0xff]  ;;  %v2295_v5 = vld [vmem:[%s4012_s3 + $0x240] sm:$0xff]  ;;  %v2185_v35 = vsub.s32 4, %v3719_v19 }
 0x1fe   : > { %3152 = vmatprep.subr.bf16.mxu1 %v3151_v44  ;;  %v2216_v4 = vmax.f32 %v2208_v57, 0.0  ;;  %v2218_v7 = vmax.f32 %v2210_v61, 0.0  ;;  %v2215_v25 = vmax.f32 %v2207_v8, 0.0  ;;  %v2323_v44 = vld [vmem:[%s4012_s3 + $0x320] sm:$0xff]  ;;  %v3169_v52 = vpack.c.bf16 %v2292_v43, %v2291_v42  ;;  %v2293_v57 = vld [vmem:[%s4012_s3 + $0x230] sm:$0xff]  ;;  %v2294_v58 = vld [vmem:[%s4012_s3 + $0x238] sm:$0xff] }
 0x1ff   : > { %v2217_v55 = vmax.f32 %v2209_v12, 0.0  ;;  %v3171_v56 = vpack.c.bf16 %v2310_v48, %v2309_v47  ;;  %v2325_v61 = vld [vmem:[%s4012_s3 + $0x330] sm:$0xff]  ;;  %v2190_v59 = vrot.slane %v3767_v17, %v2189_v20  ;;  %v2198_v1 = vrot.slane %v3767_v17, %v2197_v49  ;;  %v2344_v3 = vld [vmem:[%s4012_s3 + $0x3c8] sm:$0xff]  ;;  %v2327_v10 = vld [vmem:[%s4012_s3 + $0x340] sm:$0xff] }
 0x200   : > { %3122 = vmatpush3.bf16.msra.mxu0 %v3121_v53  ;;  %2422 = vmatprep.mubr.f32.mxu0 %v2216_v4  ;;  %v3201_v53 = vpack.c.bf16 %v2324_v46, %v2323_v44  ;;  %v3173_v4 = vpack.c.bf16 %v2294_v58, %v2293_v57  ;;  %v2162_v6 = vld [vmem:[#allocation2 + $0x28] sm:$0xff]  ;;  %v3175_v8 = vpack.c.bf16 %v2312_v0, %v2311_v63  ;;  %v2164_v12 = vld [vmem:[#allocation2 + $0x38] sm:$0xff]  ;;  %v2315_v31 = vld [vmem:[%s4012_s3 + $0x2e0] sm:$0xff] }
 0x201   : > { %3154 = vmatpush3.bf16.msra.mxu1 %v3153_v62  ;;  %3124 = vmatprep.subr.bf16.mxu0 %v3123_v60  ;;  %v3203_v62 = vpack.c.bf16 %v2342_v51, %v2341_v50  ;;  %v2326_v60 = vld [vmem:[%s4012_s3 + $0x338] sm:$0xff]  ;;  %v2296_v9 = vld [vmem:[%s4012_s3 + $0x248] sm:$0xff]  ;;  %v2214_v18 = vadd.f32 %v2198_v1, %v2164_v12  ;;  %v2331_v42 = vld [vmem:[%s4012_s3 + $0x360] sm:$0xff]  ;;  %v2186_v47 = vrot.slane %v3767_v17, %v2185_v35 }
 0x202   : > { %3156 = vmatprep.subr.bf16.mxu1 %v3155_v2  ;;  %2492 = vmatprep.mubr.f32.mxu1 %v2218_v7  ;;  %v2343_v2 = vld [vmem:[%s4012_s3 + $0x3c0] sm:$0xff]  ;;  %v3205_v7 = vpack.c.bf16 %v2326_v60, %v2325_v61  ;;  %v2314_v16 = vld [vmem:[%s4012_s3 + $0x2d8] sm:$0xff]  ;;  %v3177_v24 = vpack.c.bf16 %v2296_v9, %v2295_v5  ;;  %v2316_v32 = vld [vmem:[%s4012_s3 + $0x2e8] sm:$0xff]  ;;  %v2194_v50 = vrot.slane %v3767_v17, %v2193_v37 }
 0x203   : > { %v2346_v22 = vld [vmem:[%s4012_s3 + $0x3d8] sm:$0xff]  ;;  %v3179_v26 = vpack.c.bf16 %v2314_v16, %v2313_v15  ;;  %v2348_v34 = vld [vmem:[%s4012_s3 + $0x3e8] sm:$0xff]  ;;  %v2317_v44 = vld [vmem:[%s4012_s3 + $0x2f0] sm:$0xff] }
 0x204   : > { %3126 = vmatpush3.bf16.msra.mxu0 %v3125_v11  ;;  %v2212_v11 = vadd.f32 %v2190_v59, %v2162_v6  ;;  %v2330_v30 = vld [vmem:[%s4012_s3 + $0x358] sm:$0xff]  ;;  %v2332_v19 = vld [vmem:[%s4012_s3 + $0x368] sm:$0xff]  ;;  %v2161_v49 = vld [vmem:[#allocation2 + $0x20] sm:$0xff] }
 0x205   : > { %3158 = vmatpush3.bf16.msra.mxu1 %v3157_v13  ;;  %3160 = vmatprep.subr.bf16.mxu0 %v3159_v14  ;;  %v3207_v13 = vpack.c.bf16 %v2344_v3, %v2343_v2  ;;  %v2328_v14 = vld [vmem:[%s4012_s3 + $0x348] sm:$0xff]  ;;  %v2318_v20 = vld [vmem:[%s4012_s3 + $0x2f8] sm:$0xff]  ;;  %v3217_v51 = vpack.c.bf16 %v2332_v19, %v2331_v42  ;;  %v2163_v57 = vld [vmem:[#allocation2 + $0x30] sm:$0xff]  ;;  %v2211_v59 = vadd.f32 %v2186_v47, %v2161_v49 }
 0x206   : > { %3192 = vmatprep.subr.bf16.mxu1 %v3191_v21  ;;  %v2345_v21 = vld [vmem:[%s4012_s3 + $0x3d0] sm:$0xff]  ;;  %v2220_v23 = vmax.f32 %v2212_v11, 0.0  ;;  %v3209_v54 = vpack.c.bf16 %v2328_v14, %v2327_v10  ;;  %v2350_v46 = vld [vmem:[%s4012_s3 + $0x3f8] sm:$0xff]  ;;  %v2213_v60 = vadd.f32 %v2194_v50, %v2163_v57  ;;  %v2951_v3 = vld [vmem:[%s4013_s4] ss:$0 sm:$0xff] }
 0x207   : > { %2423 = vmatmul.mubr.f32.vlgmr.msra.gmra.mrb[0].mxu0 %v2215_v25  ;;  %v2222_v25 = vmax.f32 %v2214_v18, 0.0  ;;  %v2333_v61 = vld [vmem:[%s4012_s3 + $0x370] sm:$0xff]  ;;  %v2334_v17 = vld [vmem:[%s4012_s3 + $0x378] sm:$0xff]  ;;  %v2219_v0 = vmax.f32 %v2211_v59, 0.0 }
 0x208   : > { %3162 = vmatpush3.bf16.msra.mxu0 %v3161_v27  ;;  %2493 = vmatmul.mubr.f32.vlgmr.msra.gmra.mrb[0].mxu1 %v2217_v55  ;;  %v2297_v27 = vld [vmem:[%s4012_s3 + $0x250] sm:$0xff]  ;;  %v2298_v55 = vld [vmem:[%s4012_s3 + $0x258] sm:$0xff]  ;;  %v3221_v63 = vpack.c.bf16 %v2334_v17, %v2333_v61  ;;  %v2221_v1 = vmax.f32 %v2213_v60, 0.0 }
 0x209   : > { %3194 = vmatpush3.bf16.msra.mxu1 %v3193_v28  ;;  %3164 = vmatprep.subr.bf16.mxu0 %v3163_v29  ;;  %v2329_v28 = vld [vmem:[%s4012_s3 + $0x350] sm:$0xff]  ;;  %v3211_v29 = vpack.c.bf16 %v2346_v22, %v2345_v21  ;;  %v3181_v36 = vpack.c.bf16 %v2298_v55, %v2297_v27 }
 0x20a   : > { %3196 = vmatprep.subr.bf16.mxu1 %v3195_v33  ;;  %2562 = vmatprep.mubr.f32.mxu0 %v2220_v23  ;;  %v2347_v33 = vld [vmem:[%s4012_s3 + $0x3e0] sm:$0xff]  ;;  %v3213_v38 = vpack.c.bf16 %v2330_v30, %v2329_v28 }
 0x20b   : > { %2632 = vmatprep.mubr.f32.mxu1 %v2222_v25  ;;  %v3215_v43 = vpack.c.bf16 %v2348_v34, %v2347_v33 }
 0x20c   : > { %3166 = vmatpush3.bf16.msra.mxu0 %v3165_v39  ;;  %v3183_v39 = vpack.c.bf16 %v2316_v32, %v2315_v31 }
 0x20d   : > { %3198 = vmatpush3.bf16.msra.mxu1 %v3197_v40  ;;  %3168 = vmatprep.subr.bf16.mxu0 %v3167_v41  ;;  %v2299_v40 = vld [vmem:[%s4012_s3 + $0x260] sm:$0xff]  ;;  %v2300_v41 = vld [vmem:[%s4012_s3 + $0x268] sm:$0xff] }
 0x20e   : > { %3200 = vmatprep.subr.bf16.mxu1 %v3199_v45  ;;  %v2349_v45 = vld [vmem:[%s4012_s3 + $0x3f0] sm:$0xff]  ;;  %v3185_v48 = vpack.c.bf16 %v2300_v41, %v2299_v40 }
 0x20f   : > { %v3219_v58 = vpack.c.bf16 %v2350_v46, %v2349_v45 }
 0x210   : > { %3170 = vmatpush3.bf16.msra.mxu0 %v3169_v52  ;;  %v3187_v52 = vpack.c.bf16 %v2318_v20, %v2317_v44 }
 0x211   : > { %3202 = vmatpush3.bf16.msra.mxu1 %v3201_v53  ;;  %3172 = vmatprep.subr.bf16.mxu0 %v3171_v56  ;;  %v2301_v53 = vld [vmem:[%s4012_s3 + $0x270] sm:$0xff]  ;;  %v2302_v56 = vld [vmem:[%s4012_s3 + $0x278] sm:$0xff] }
 0x212   : > { %3204 = vmatprep.subr.bf16.mxu1 %v3203_v62  ;;  %v3189_v62 = vpack.c.bf16 %v2302_v56, %v2301_v53 }
 0x214   : > { %3174 = vmatpush3.bf16.msra.mxu0 %v3173_v4 }
 0x215   : > { %3206 = vmatpush3.bf16.msra.mxu1 %v3205_v7  ;;  %3176 = vmatprep.subr.bf16.mxu0 %v3175_v8 }
 0x216   : > { %3208 = vmatprep.subr.bf16.mxu1 %v3207_v13 }
 0x218   : > { %3178 = vmatpush3.bf16.msra.mxu0 %v3177_v24 }
 0x219   : > { %3210 = vmatpush3.bf16.msra.mxu1 %v3209_v54  ;;  %3180 = vmatprep.subr.bf16.mxu0 %v3179_v26 }
 0x21a   : > { %3212 = vmatprep.subr.bf16.mxu1 %v3211_v29 }
 0x21c   : > { %3182 = vmatpush3.bf16.msra.mxu0 %v3181_v36 }
 0x21d   : > { %3214 = vmatpush3.bf16.msra.mxu1 %v3213_v38  ;;  %3184 = vmatprep.subr.bf16.mxu0 %v3183_v39 }
 0x21e   : > { %3216 = vmatprep.subr.bf16.mxu1 %v3215_v43 }
 0x220   : > { %3186 = vmatpush3.bf16.msra.mxu0 %v3185_v48 }
 0x221   : > { %3218 = vmatpush3.bf16.msra.mxu1 %v3217_v51  ;;  %3188 = vmatprep.subr.bf16.mxu0 %v3187_v52 }
 0x222   : > { %3220 = vmatprep.subr.bf16.mxu1 %v3219_v58 }
 0x224   : > { %3190 = vmatpush3.bf16.msra.mxu0 %v3189_v62 }
 0x225   : > { %3222 = vmatpush3.bf16.msra.mxu1 %v3221_v63 }
 0x227   : > { %2563 = vmatmul.mubr.f32.vlgmr.msra.gmra.mrb[2].mxu0 %v2219_v0 }
 0x228   : > { %2633 = vmatmul.mubr.f32.vlgmr.msra.gmra.mrb[2].mxu1 %v2221_v1 }
 0x2da   : > { %v2987_v2 = vpop.f32.mrb[0].mxu0 }
 0x2db   : > { %v2988_v4 = vpop.f32.mrb[1].mxu0  ;;  %v3022_v5 = vpop.f32.mrb[0].mxu1 }
 0x2dc   : > { %v2989_v6 = vadd.f32 %v2988_v4, %v2987_v2  ;;  %v3023_v7 = vpop.f32.mrb[1].mxu1 }
 0x2dd   : > { %v3024_v8 = vadd.f32 %v3023_v7, %v3022_v5 }
 0x2de   : > { %v2425_v9 = vadd.f32 %v2989_v6, %v2951_v3 }
 0x2e0   : > { %v2495_v10 = vadd.f32 %v3024_v8, %v2425_v9 }
 0x2fa   : > { %v3057_v11 = vpop.f32.mrb[2].mxu0 }
 0x2fb   : > { %v3058_v12 = vpop.f32.mrb[3].mxu0  ;;  %v3092_v13 = vpop.f32.mrb[2].mxu1 }
 0x2fc   : > { %v3059_v14 = vadd.f32 %v3058_v12, %v3057_v11  ;;  %v3093_v15 = vpop.f32.mrb[3].mxu1 }
 0x2fd   : > { %v3094_v16 = vadd.f32 %v3093_v15, %v3092_v13 }
 0x2fe   : > { %v2565_v18 = vadd.f32 %v3059_v14, %v2495_v10 }
 0x300   : > { %v2635_v21 = vadd.f32 %v3094_v16, %v2565_v18 }
 0x302   : > { %2639 = vst.msk [vmem:[%s4014_s5] sm:$0xff] %vm2638_vm0, %v2635_v21 }
 0x303 PF: > { %s15_s18 = sadd.s32 1, %s3242_s18  }
 0x304   : > { %p12_p7 = scmp.ge.s32.totalorder %s15_s18, 6  }
 0x306   :  { %14 = sbr.rel (!%p12_p7) target bundleno = 1 (0x1), region = 77 }

</bundles_post_ra>
